<compile_context>
chip_gen: v7x
topology: tpu7x:2x2x1
jax: 0.10.0
libtpu: 0.0.40
codegen_flags: <defaults>
</compile_context>

<pallas_src>
import functools

import jax
import jax.numpy as jnp
from jax.experimental import pallas as pl
from jax.experimental.pallas import tpu as pltpu

IMG_SIZE = 32
N_CHANNELS = 1
IN_FEATURES = N_CHANNELS * IMG_SIZE * IMG_SIZE  # 1024
H1 = 512
H2 = 256
OUT_FEATURES = 1
OUT_PAD = 128  # lane-dense padded output width
NEG_SLOPE = 0.2


def _leaky_relu(x, neg_slope=NEG_SLOPE):
    # Matches torch.nn.LeakyReLU(0.2): x if x > 0 else 0.2 * x.
    return jnp.where(x > 0, x, neg_slope * x)


def _round_up(v, m):
    return ((v + m - 1) // m) * m


def _discriminator_kernel(x_ref, w1_ref, b1_ref, w2_ref, b2_ref, w3_ref, b3_ref, o_ref):
    # x / W* are bf16; accumulate every matmul in f32, do bias + LeakyReLU in
    # f32, and feed the next MXU op bf16 operands again.
    x = x_ref[...]

    h1 = jnp.dot(x, w1_ref[...], preferred_element_type=jnp.float32) + b1_ref[...]
    h1 = _leaky_relu(h1).astype(jnp.bfloat16)

    h2 = jnp.dot(h1, w2_ref[...], preferred_element_type=jnp.float32) + b2_ref[...]
    h2 = _leaky_relu(h2).astype(jnp.bfloat16)

    out = jnp.dot(h2, w3_ref[...], preferred_element_type=jnp.float32) + b3_ref[...]
    o_ref[...] = out.astype(o_ref.dtype)


@functools.partial(jax.jit, static_argnames=("max_tile_m",))
def discriminator_forward(img, w1, b1, w2, b2, w3, b3, *, max_tile_m=1024):
    """Pallas implementation of Discriminator.forward.

    img: (N, C, H, W). Weights are (in, out) so the kernel computes x @ W + b
    (the transpose of PyTorch's stored (out, in) layout).
    """
    n = img.shape[0]
    x = img.reshape(n, -1)
    in_f = x.shape[1]
    assert in_f == w1.shape[0], "flattened image size must match W1 input dim"

    out_dtype = x.dtype

    # bf16 MXU operands (f32 accumulation happens inside the kernel).
    x_bf = x.astype(jnp.bfloat16)
    w1_bf = w1.astype(jnp.bfloat16)
    w2_bf = w2.astype(jnp.bfloat16)

    # Lane-dense final layer: zero-pad W3/b3 to 128 output columns.
    w3_p = jnp.zeros((w3.shape[0], OUT_PAD), jnp.bfloat16)
    w3_p = w3_p.at[:, :OUT_FEATURES].set(w3.astype(jnp.bfloat16))
    b3_p = jnp.zeros((1, OUT_PAD), jnp.float32)
    b3_p = b3_p.at[:, :OUT_FEATURES].set(b3.reshape(1, -1).astype(jnp.float32))

    # Biases as f32 (1, F) rows so they broadcast over the batch tile.
    b1_2d = b1.reshape(1, -1).astype(jnp.float32)
    b2_2d = b2.reshape(1, -1).astype(jnp.float32)

    # Batch tiling:
    #  * tiny batch -> single full-batch block (block dim == array dim, exempt
    #    from the (8,128) rule)
    #  * otherwise sublane-aligned tiles sized so the parallel grid has >= 2
    #    steps (keeps both v7x TensorCores busy), capped at max_tile_m.
    if n <= 16:
        tile_m = n
    else:
        tile_m = min(max_tile_m, _round_up(pl.cdiv(n, 2), 8))
    grid = (pl.cdiv(n, tile_m),)

    flops = 2 * n * (in_f * H1 + H1 * H2 + H2 * OUT_PAD)
    bytes_accessed = (
        2 * (x_bf.size + w1_bf.size + w2_bf.size + w3_p.size)
        + 4 * (b1_2d.size + b2_2d.size + b3_p.size + n * OUT_PAD)
    )
    cost = pl.CostEstimate(flops=flops, transcendentals=0, bytes_accessed=bytes_accessed)

    out_padded = pl.pallas_call(
        _discriminator_kernel,
        out_shape=jax.ShapeDtypeStruct((n, OUT_PAD), out_dtype),
        grid_spec=pltpu.PrefetchScalarGridSpec(
            num_scalar_prefetch=0,
            grid=grid,
            in_specs=[
                pl.BlockSpec((tile_m, in_f), lambda i: (i, 0)),     # x tile (bf16)
                pl.BlockSpec((in_f, H1), lambda i: (0, 0)),         # W1 (resident, bf16)
                pl.BlockSpec((1, H1), lambda i: (0, 0)),            # b1 (f32)
                pl.BlockSpec((H1, H2), lambda i: (0, 0)),           # W2 (resident, bf16)
                pl.BlockSpec((1, H2), lambda i: (0, 0)),            # b2 (f32)
                pl.BlockSpec((H2, OUT_PAD), lambda i: (0, 0)),      # W3 padded (resident, bf16)
                pl.BlockSpec((1, OUT_PAD), lambda i: (0, 0)),       # b3 padded (f32)
            ],
            out_specs=pl.BlockSpec((tile_m, OUT_PAD), lambda i: (i, 0)),
        ),
        compiler_params=pltpu.CompilerParams(
            dimension_semantics=("parallel",),
            vmem_limit_bytes=32 * 1024 * 1024,
        ),
        cost_estimate=cost,
    )(x_bf, w1_bf, b1_2d, w2_bf, b2_2d, w3_p, b3_p)

    # Slice the lane-dense slab back to the module's (N, 1) output.
    return out_padded[:, :OUT_FEATURES]


def _reference_forward(img, w1, b1, w2, b2, w3, b3):
    x = img.reshape(img.shape[0], -1).astype(jnp.float32)
    h1 = _leaky_relu(x @ w1 + b1)
    h2 = _leaky_relu(h1 @ w2 + b2)
    return (h2 @ w3 + b3).astype(img.dtype)


if __name__ == "__main__":
    key = jax.random.PRNGKey(0)
    k_img, k_w1, k_b1, k_w2, k_b2, k_w3, k_b3 = jax.random.split(key, 7)

    # Small, module-consistent shapes: batch=2, 1x32x32 images.
    img = jax.random.normal(k_img, (2, N_CHANNELS, IMG_SIZE, IMG_SIZE), dtype=jnp.float32)

    # PyTorch-default-style uniform init (bounds don't matter for correctness).
    def uinit(k, shape, fan_in):
        bound = 1.0 / (fan_in ** 0.5)
        return jax.random.uniform(k, shape, jnp.float32, -bound, bound)

    w1 = uinit(k_w1, (IN_FEATURES, H1), IN_FEATURES)
    b1 = uinit(k_b1, (H1,), IN_FEATURES)
    w2 = uinit(k_w2, (H1, H2), H1)
    b2 = uinit(k_b2, (H2,), H1)
    w3 = uinit(k_w3, (H2, OUT_FEATURES), H2)
    b3 = uinit(k_b3, (OUT_FEATURES,), H2)

    validity = discriminator_forward(img, w1, b1, w2, b2, w3, b3)
    validity = jax.block_until_ready(validity)

    ref = _reference_forward(img, w1, b1, w2, b2, w3, b3)

    assert validity.shape == (2, OUT_FEATURES), validity.shape
    assert validity.dtype == img.dtype
    # bf16 MXU operands (f32 accumulation) vs. pure-f32 reference -> loose tol.
    assert jnp.allclose(validity, ref, rtol=5e-2, atol=5e-2), (
        "mismatch vs reference:\n%s\nvs\n%s" % (validity, ref)
    )

    print("KERNEL_OK")
</pallas_src>

<mosaic_0001>
module attributes {stable_mosaic.version = 11 : i64} {
  func.func @_discriminator_kernel(%arg0: i32, %arg1: memref<2x1024xbf16, #tpu.memory_space<vmem>>, %arg2: memref<1024x512xbf16, #tpu.memory_space<vmem>>, %arg3: memref<1x512xf32, #tpu.memory_space<vmem>>, %arg4: memref<512x256xbf16, #tpu.memory_space<vmem>>, %arg5: memref<1x256xf32, #tpu.memory_space<vmem>>, %arg6: memref<256x128xbf16, #tpu.memory_space<vmem>>, %arg7: memref<1x128xf32, #tpu.memory_space<vmem>>, %arg8: memref<2x128xf32, #tpu.memory_space<vmem>>) attributes {dimension_semantics = [#tpu.dimension_semantics<parallel>], iteration_bounds = array<i64: 1>, scalar_prefetch = 0 : i64, scratch_operands = 0 : i64, tpu.core_type = #tpu.core_type<tc>, window_params = [{transform_indices = @transform_0, window_bounds = array<i64: 2, 1024>}, {pipeline_mode = #tpu.pipeline_mode<synchronous>, transform_indices = @transform_1, window_bounds = array<i64: 1024, 512>}, {pipeline_mode = #tpu.pipeline_mode<synchronous>, transform_indices = @transform_2, window_bounds = array<i64: 1, 512>}, {pipeline_mode = #tpu.pipeline_mode<synchronous>, transform_indices = @transform_3, window_bounds = array<i64: 512, 256>}, {pipeline_mode = #tpu.pipeline_mode<synchronous>, transform_indices = @transform_4, window_bounds = array<i64: 1, 256>}, {pipeline_mode = #tpu.pipeline_mode<synchronous>, transform_indices = @transform_5, window_bounds = array<i64: 256, 128>}, {pipeline_mode = #tpu.pipeline_mode<synchronous>, transform_indices = @transform_6, window_bounds = array<i64: 1, 128>}, {transform_indices = @transform_7, window_bounds = array<i64: 2, 128>}]} {
    %c0 = arith.constant 0 : index
    %c0_0 = arith.constant 0 : index
    %0 = vector.load %arg1[%c0, %c0_0] : memref<2x1024xbf16, #tpu.memory_space<vmem>>, vector<2x1024xbf16>
    %c0_1 = arith.constant 0 : index
    %c0_2 = arith.constant 0 : index
    %1 = vector.load %arg2[%c0_1, %c0_2] : memref<1024x512xbf16, #tpu.memory_space<vmem>>, vector<1024x512xbf16>
    %cst = arith.constant dense<0.000000e+00> : vector<2x512xf32>
    %2 = tpu.matmul %0, %1, %cst {dimension_numbers = #tpu.dot_dimension_numbers<[1], [0], [0], [1], [0, 0, 1, 1], [], []>} : vector<2x1024xbf16>, vector<1024x512xbf16>, vector<2x512xf32> -> vector<2x512xf32>
    %c0_3 = arith.constant 0 : index
    %c0_4 = arith.constant 0 : index
    %3 = vector.load %arg3[%c0_3, %c0_4] : memref<1x512xf32, #tpu.memory_space<vmem>>, vector<1x512xf32>
    %4 = vector.broadcast %3 : vector<1x512xf32> to vector<2x512xf32>
    %5 = arith.addf %2, %4 : vector<2x512xf32>
    %cst_5 = arith.constant 0.000000e+00 : f32
    %6 = vector.broadcast %cst_5 : f32 to vector<2x512xf32>
    %7 = arith.cmpf ogt, %5, %6 : vector<2x512xf32>
    %cst_6 = arith.constant 2.000000e-01 : f32
    %8 = vector.broadcast %cst_6 : f32 to vector<2x512xf32>
    %9 = arith.mulf %8, %5 : vector<2x512xf32>
    %10 = arith.select %7, %5, %9 : vector<2x512xi1>, vector<2x512xf32>
    %11 = arith.truncf %10 : vector<2x512xf32> to vector<2x512xbf16>
    %c0_7 = arith.constant 0 : index
    %c0_8 = arith.constant 0 : index
    %12 = vector.load %arg4[%c0_7, %c0_8] : memref<512x256xbf16, #tpu.memory_space<vmem>>, vector<512x256xbf16>
    %cst_9 = arith.constant dense<0.000000e+00> : vector<2x256xf32>
    %13 = tpu.matmul %11, %12, %cst_9 {dimension_numbers = #tpu.dot_dimension_numbers<[1], [0], [0], [1], [0, 0, 1, 1], [], []>} : vector<2x512xbf16>, vector<512x256xbf16>, vector<2x256xf32> -> vector<2x256xf32>
    %c0_10 = arith.constant 0 : index
    %c0_11 = arith.constant 0 : index
    %14 = vector.load %arg5[%c0_10, %c0_11] : memref<1x256xf32, #tpu.memory_space<vmem>>, vector<1x256xf32>
    %15 = vector.broadcast %14 : vector<1x256xf32> to vector<2x256xf32>
    %16 = arith.addf %13, %15 : vector<2x256xf32>
    %cst_12 = arith.constant 0.000000e+00 : f32
    %17 = vector.broadcast %cst_12 : f32 to vector<2x256xf32>
    %18 = arith.cmpf ogt, %16, %17 : vector<2x256xf32>
    %cst_13 = arith.constant 2.000000e-01 : f32
    %19 = vector.broadcast %cst_13 : f32 to vector<2x256xf32>
    %20 = arith.mulf %19, %16 : vector<2x256xf32>
    %21 = arith.select %18, %16, %20 : vector<2x256xi1>, vector<2x256xf32>
    %22 = arith.truncf %21 : vector<2x256xf32> to vector<2x256xbf16>
    %c0_14 = arith.constant 0 : index
    %c0_15 = arith.constant 0 : index
    %23 = vector.load %arg6[%c0_14, %c0_15] : memref<256x128xbf16, #tpu.memory_space<vmem>>, vector<256x128xbf16>
    %cst_16 = arith.constant dense<0.000000e+00> : vector<2x128xf32>
    %24 = tpu.matmul %22, %23, %cst_16 {dimension_numbers = #tpu.dot_dimension_numbers<[1], [0], [0], [1], [0, 0, 1, 1], [], []>} : vector<2x256xbf16>, vector<256x128xbf16>, vector<2x128xf32> -> vector<2x128xf32>
    %c0_17 = arith.constant 0 : index
    %c0_18 = arith.constant 0 : index
    %25 = vector.load %arg7[%c0_17, %c0_18] : memref<1x128xf32, #tpu.memory_space<vmem>>, vector<1x128xf32>
    %26 = vector.broadcast %25 : vector<1x128xf32> to vector<2x128xf32>
    %27 = arith.addf %24, %26 : vector<2x128xf32>
    %c0_19 = arith.constant 0 : index
    %c0_20 = arith.constant 0 : index
    %28 = vector.load %arg8[%c0_19, %c0_20] : memref<2x128xf32, #tpu.memory_space<vmem>>, vector<2x128xf32>
    tpu.vector_store %arg8[%c0_19, %c0_20], %27 {strides = array<i32>} : memref<2x128xf32, #tpu.memory_space<vmem>>, vector<2x128xf32>,
    return
  }
  func.func @transform_0(%arg0: i32) -> (i32, i32) {
    %c0_i32 = arith.constant 0 : i32
    %c0_i32_0 = arith.constant 0 : i32
    return %arg0, %c0_i32 : i32, i32
  }
  func.func @transform_1(%arg0: i32) -> (i32, i32) {
    %c0_i32 = arith.constant 0 : i32
    %c0_i32_0 = arith.constant 0 : i32
    %c0_i32_1 = arith.constant 0 : i32
    return %c0_i32, %c0_i32_0 : i32, i32
  }
  func.func @transform_2(%arg0: i32) -> (i32, i32) {
    %c0_i32 = arith.constant 0 : i32
    %c0_i32_0 = arith.constant 0 : i32
    %c0_i32_1 = arith.constant 0 : i32
    return %c0_i32, %c0_i32_0 : i32, i32
  }
  func.func @transform_3(%arg0: i32) -> (i32, i32) {
    %c0_i32 = arith.constant 0 : i32
    %c0_i32_0 = arith.constant 0 : i32
    %c0_i32_1 = arith.constant 0 : i32
    return %c0_i32, %c0_i32_0 : i32, i32
  }
  func.func @transform_4(%arg0: i32) -> (i32, i32) {
    %c0_i32 = arith.constant 0 : i32
    %c0_i32_0 = arith.constant 0 : i32
    %c0_i32_1 = arith.constant 0 : i32
    return %c0_i32, %c0_i32_0 : i32, i32
  }
  func.func @transform_5(%arg0: i32) -> (i32, i32) {
    %c0_i32 = arith.constant 0 : i32
    %c0_i32_0 = arith.constant 0 : i32
    %c0_i32_1 = arith.constant 0 : i32
    return %c0_i32, %c0_i32_0 : i32, i32
  }
  func.func @transform_6(%arg0: i32) -> (i32, i32) {
    %c0_i32 = arith.constant 0 : i32
    %c0_i32_0 = arith.constant 0 : i32
    %c0_i32_1 = arith.constant 0 : i32
    return %c0_i32, %c0_i32_0 : i32, i32
  }
  func.func @transform_7(%arg0: i32) -> (i32, i32) {
    %c0_i32 = arith.constant 0 : i32
    %c0_i32_0 = arith.constant 0 : i32
    return %arg0, %c0_i32 : i32, i32
  }
}

</mosaic_0001>

<bundles_post_ra>
// kernel: discriminator_forward.1
= control target key start
LH: loop header
LB: loop body
LE: loop exit
PB: predicated region body
PF: predicated region fallthrough
CT: control target
= control target key end

     0   :  { %v286_v36 = vlaneseq  ;;  %v3543_v37 = vmov 1966171168   ;;  %s4670_s1 = inlined_call_operand.vmem [shape: bf16[1024,512], index: 1, kind: input, shape index: {}]   ;;  %s4671_s0 = inlined_call_operand.vmem [shape: bf16[2,1024], index: 0, kind: input, shape index: {}]   ;;  %s4672_s3 = inlined_call_operand.vmem [shape: bf16[512,256], index: 3, kind: input, shape index: {}]   ;;  %s4673_s2 = inlined_call_operand.vmem [shape: f32[1,512], index: 2, kind: input, shape index: {}]   ;;  %s4674_s5 = inlined_call_operand.vmem [shape: bf16[256,128], index: 5, kind: input, shape index: {}]   ;;  %s4675_s4 = inlined_call_operand.vmem [shape: f32[1,256], index: 4, kind: input, shape index: {}]   ;;  %s4676_s6 = inlined_call_operand.vmem [shape: f32[1,128], index: 6, kind: input, shape index: {}]   ;;  %s4677_s7 = inlined_call_operand.vmem [shape: f32[2,128], index: 7, kind: output, shape index: {}]  }
   0x1   :  { %v3046_v0 = vld [vmem:[%s4670_s1 + $0x4] ss:$16 sps:$4 sm:$0xff]   ;;  %v3050_v2 = vld [vmem:[%s4670_s1] ss:$16 sps:$4 sm:$0xff]   ;;  %v309_v38 = vunpack.c.l.s4 %v3543_v37  ;;  %v3169_v37 = vld [vmem:[%s4670_s1 + $0x88] ss:$16 sps:$4 sm:$0xff]  }
   0x2   :  { %v3048_v1 = vld [vmem:[%s4670_s1 + $0x204] ss:$16 sps:$4 sm:$0xff]   ;;  %1644 = vmatprep.subr.bf16.mxu1 %v3046_v0  ;;  %v3051_v3 = vld [vmem:[%s4670_s1 + $0x200] ss:$16 sps:$4 sm:$0xff]   ;;  %v3701_v42 = vshrl.u32 %v286_v36, 7 }
   0x3   :  { %1685 = vmatprep.subr.bf16.mxu0 %v3048_v1  ;;  %v3052_v4 = vld [vmem:[%s4670_s1 + $0x24] ss:$16 sps:$4 sm:$0xff]   ;;  %1645 = vmatpush1.bf16.msra.mxu1 %v3050_v2  ;;  %v3056_v6 = vld [vmem:[%s4670_s1 + $0x20] ss:$16 sps:$4 sm:$0xff]   ;;  %v310_v43 = vunpack.c.0.s8 %v309_v38 }
   0x4   :  { %1686 = vmatpush1.bf16.msra.mxu0 %v3051_v3  ;;  %v3054_v5 = vld [vmem:[%s4670_s1 + $0x224] ss:$16 sps:$4 sm:$0xff]   ;;  %1646 = vmatprep.subr.bf16.mxu1 %v3052_v4  ;;  %v3057_v7 = vld [vmem:[%s4670_s1 + $0x220] ss:$16 sps:$4 sm:$0xff]  }
   0x5   :  { %1687 = vmatprep.subr.bf16.mxu0 %v3054_v5  ;;  %v3058_v8 = vld [vmem:[%s4670_s1 + $0x44] ss:$16 sps:$4 sm:$0xff]   ;;  %v3062_v10 = vld [vmem:[%s4670_s1 + $0x40] ss:$16 sps:$4 sm:$0xff]   ;;  %v3719_v49 = vsub.s32 %v310_v43, %v3701_v42 }
   0x6   :  { %v3060_v9 = vld [vmem:[%s4670_s1 + $0x244] ss:$16 sps:$4 sm:$0xff]   ;;  %v3063_v11 = vld [vmem:[%s4670_s1 + $0x240] ss:$16 sps:$4 sm:$0xff]  }
   0x7   :  { %1647 = vmatpush1.bf16.msra.mxu1 %v3056_v6  ;;  %v3064_v12 = vld [vmem:[%s4670_s1 + $0x64] ss:$16 sps:$4 sm:$0xff]   ;;  %v3068_v14 = vld [vmem:[%s4670_s1 + $0x60] ss:$16 sps:$4 sm:$0xff]  }
   0x8   :  { %1688 = vmatpush1.bf16.msra.mxu0 %v3057_v7  ;;  %1648 = vmatprep.subr.bf16.mxu1 %v3058_v8  ;;  %v3066_v13 = vld [vmem:[%s4670_s1 + $0x264] ss:$16 sps:$4 sm:$0xff]   ;;  %v3069_v15 = vld [vmem:[%s4670_s1 + $0x260] ss:$16 sps:$4 sm:$0xff]  }
   0x9   :  { %1689 = vmatprep.subr.bf16.mxu0 %v3060_v9  ;;  %v3070_v16 = vld [vmem:[%s4670_s1 + $0x84] ss:$16 sps:$4 sm:$0xff]   ;;  %v3074_v18 = vld [vmem:[%s4670_s1 + $0x80] ss:$16 sps:$4 sm:$0xff]  }
   0xa   :  { %v3072_v17 = vld [vmem:[%s4670_s1 + $0x284] ss:$16 sps:$4 sm:$0xff]   ;;  %v3075_v19 = vld [vmem:[%s4670_s1 + $0x280] ss:$16 sps:$4 sm:$0xff]  }
   0xb   :  { %1649 = vmatpush1.bf16.msra.mxu1 %v3062_v10  ;;  %v3076_v20 = vld [vmem:[%s4670_s1 + $0xa4] ss:$16 sps:$4 sm:$0xff]   ;;  %v3080_v22 = vld [vmem:[%s4670_s1 + $0xa0] ss:$16 sps:$4 sm:$0xff]  }
   0xc   :  { %1690 = vmatpush1.bf16.msra.mxu0 %v3063_v11  ;;  %1650 = vmatprep.subr.bf16.mxu1 %v3064_v12  ;;  %v3078_v21 = vld [vmem:[%s4670_s1 + $0x2a4] ss:$16 sps:$4 sm:$0xff]   ;;  %v3081_v23 = vld [vmem:[%s4670_s1 + $0x2a0] ss:$16 sps:$4 sm:$0xff]  }
   0xd   :  { %1691 = vmatprep.subr.bf16.mxu0 %v3066_v13  ;;  %v3082_v24 = vld [vmem:[%s4670_s1 + $0xc4] ss:$16 sps:$4 sm:$0xff]   ;;  %v3086_v26 = vld [vmem:[%s4670_s1 + $0xc0] ss:$16 sps:$4 sm:$0xff]  }
   0xe   :  { %v3084_v25 = vld [vmem:[%s4670_s1 + $0x2c4] ss:$16 sps:$4 sm:$0xff]   ;;  %v3087_v27 = vld [vmem:[%s4670_s1 + $0x2c0] ss:$16 sps:$4 sm:$0xff]  }
   0xf   :  { %1651 = vmatpush1.bf16.msra.mxu1 %v3068_v14  ;;  %v3088_v28 = vld [vmem:[%s4670_s1 + $0xe4] ss:$16 sps:$4 sm:$0xff]   ;;  %v3092_v30 = vld [vmem:[%s4670_s1 + $0xe0] ss:$16 sps:$4 sm:$0xff]  }
  0x10   :  { %1692 = vmatpush1.bf16.msra.mxu0 %v3069_v15  ;;  %1652 = vmatprep.subr.bf16.mxu1 %v3070_v16  ;;  %v3090_v29 = vld [vmem:[%s4670_s1 + $0x2e4] ss:$16 sps:$4 sm:$0xff]   ;;  %v3093_v31 = vld [vmem:[%s4670_s1 + $0x2e0] ss:$16 sps:$4 sm:$0xff]   ;;  %v3147_v16 = vld [vmem:[%s4670_s1 + $0xc] ss:$16 sps:$4 sm:$0xff]  }
  0x11   :  { %1693 = vmatprep.subr.bf16.mxu0 %v3072_v17  ;;  %v3094_v32 = vld [vmem:[%s4670_s1 + $0x104] ss:$16 sps:$4 sm:$0xff]   ;;  %v3098_v34 = vld [vmem:[%s4670_s1 + $0x100] ss:$16 sps:$4 sm:$0xff]  }
  0x12   :  { %v3096_v33 = vld [vmem:[%s4670_s1 + $0x304] ss:$16 sps:$4 sm:$0xff]   ;;  %v3099_v35 = vld [vmem:[%s4670_s1 + $0x300] ss:$16 sps:$4 sm:$0xff]  }
  0x13   :  { %1653 = vmatpush1.bf16.msra.mxu1 %v3074_v18  ;;  %v3100_v39 = vld [vmem:[%s4670_s1 + $0x124] ss:$16 sps:$4 sm:$0xff]   ;;  %v3104_v41 = vld [vmem:[%s4670_s1 + $0x120] ss:$16 sps:$4 sm:$0xff]  }
  0x14   :  { %1694 = vmatpush1.bf16.msra.mxu0 %v3075_v19  ;;  %1654 = vmatprep.subr.bf16.mxu1 %v3076_v20  ;;  %v3102_v40 = vld [vmem:[%s4670_s1 + $0x324] ss:$16 sps:$4 sm:$0xff]   ;;  %v3105_v44 = vld [vmem:[%s4670_s1 + $0x320] ss:$16 sps:$4 sm:$0xff]   ;;  %v3145_v20 = vld [vmem:[%s4670_s1 + $0x8] ss:$16 sps:$4 sm:$0xff]  }
  0x15   :  { %1695 = vmatprep.subr.bf16.mxu0 %v3078_v21  ;;  %v3106_v45 = vld [vmem:[%s4670_s1 + $0x144] ss:$16 sps:$4 sm:$0xff]   ;;  %v3110_v47 = vld [vmem:[%s4670_s1 + $0x140] ss:$16 sps:$4 sm:$0xff]  }
  0x16   :  { %v3108_v46 = vld [vmem:[%s4670_s1 + $0x344] ss:$16 sps:$4 sm:$0xff]   ;;  %v3111_v48 = vld [vmem:[%s4670_s1 + $0x340] ss:$16 sps:$4 sm:$0xff]  }
  0x17   :  { %1655 = vmatpush1.bf16.msra.mxu1 %v3080_v22  ;;  %v3112_v50 = vld [vmem:[%s4670_s1 + $0x164] ss:$16 sps:$4 sm:$0xff]   ;;  %v3116_v53 = vld [vmem:[%s4670_s1 + $0x160] ss:$16 sps:$4 sm:$0xff]   ;;  %v3153_v22 = vld [vmem:[%s4670_s1 + $0x2c] ss:$16 sps:$4 sm:$0xff]  }
  0x18   :  { %1696 = vmatpush1.bf16.msra.mxu0 %v3081_v23  ;;  %1656 = vmatprep.subr.bf16.mxu1 %v3082_v24  ;;  %v3114_v51 = vld [vmem:[%s4670_s1 + $0x364] ss:$16 sps:$4 sm:$0xff]   ;;  %v3117_v56 = vld [vmem:[%s4670_s1 + $0x360] ss:$16 sps:$4 sm:$0xff]  }
  0x19   :  { %1697 = vmatprep.subr.bf16.mxu0 %v3084_v25  ;;  %v27_v52 = vld [vmem:[%s4671_s0] sm:$0xff]  ;;  %v3151_v25 = vld [vmem:[%s4670_s1 + $0x28] ss:$16 sps:$4 sm:$0xff]  }
  0x1a   :  { %v314_v54 = vrot.slane %v27_v52, %v3719_v49  ;;  %v307_v55 = vcombine.high %v27_v52, %v27_v52  ;;  %v3118_v57 = vld [vmem:[%s4670_s1 + $0x184] ss:$16 sps:$4 sm:$0xff]   ;;  %v3122_v61 = vld [vmem:[%s4670_s1 + $0x180] ss:$16 sps:$4 sm:$0xff]   ;;  %v3195_v52 = vld [vmem:[%s4670_s1 + $0x10c] ss:$16 sps:$4 sm:$0xff]  }
  0x1b   :  { %1657 = vmatpush1.bf16.msra.mxu1 %v3086_v26  ;;  %v3120_v58 = vld [vmem:[%s4670_s1 + $0x384] ss:$16 sps:$4 sm:$0xff]   ;;  %v3123_v0 = vld [vmem:[%s4670_s1 + $0x380] ss:$16 sps:$4 sm:$0xff]  }
  0x1c   :  { %1698 = vmatpush1.bf16.msra.mxu0 %v3087_v27  ;;  %1658 = vmatprep.subr.bf16.mxu1 %v3088_v28  ;;  %v322_v59 = vcombine.high %v314_v54, %v314_v54  ;;  %v321_v60 = vrot.slane %v307_v55, %v3719_v49  ;;  %v3124_v1 = vld [vmem:[%s4670_s1 + $0x1a4] ss:$16 sps:$4 sm:$0xff]   ;;  %v3128_v4 = vld [vmem:[%s4670_s1 + $0x1a0] ss:$16 sps:$4 sm:$0xff]   ;;  %v3791_v13 = vrot.slane %v314_v54, %v3719_v49  ;;  %v3159_v27 = vld [vmem:[%s4670_s1 + $0x4c] ss:$16 sps:$4 sm:$0xff]  }
  0x1d   :  { %1699 = vmatprep.subr.bf16.mxu0 %v3090_v29  ;;  %v3126_v2 = vld [vmem:[%s4670_s1 + $0x3a4] ss:$16 sps:$4 sm:$0xff]   ;;  %v3129_v5 = vld [vmem:[%s4670_s1 + $0x3a0] ss:$16 sps:$4 sm:$0xff]   ;;  %v3157_v29 = vld [vmem:[%s4670_s1 + $0x48] ss:$16 sps:$4 sm:$0xff]  }
  0x1e   :  { %v344_v62 = vrot.slane %v322_v59, %v3719_v49  ;;  %v3749_v63 = vrot.slane %v321_v60, %v3719_v49  ;;  %v3130_v6 = vld [vmem:[%s4670_s1 + $0x1c4] ss:$16 sps:$4 sm:$0xff]   ;;  %v3134_v8 = vld [vmem:[%s4670_s1 + $0x1c0] ss:$16 sps:$4 sm:$0xff]   ;;  %v323_v17 = vcombine.high %v321_v60, %v321_v60  ;;  %v3807_v19 = vcombine.high %v3791_v13, %v3791_v13  ;;  %v3193_v54 = vld [vmem:[%s4670_s1 + $0x108] ss:$16 sps:$4 sm:$0xff]  }
  0x1f   :  { %1659 = vmatpush1.bf16.msra.mxu1 %v3092_v30  ;;  %v3132_v7 = vld [vmem:[%s4670_s1 + $0x3c4] ss:$16 sps:$4 sm:$0xff]   ;;  %v3135_v9 = vld [vmem:[%s4670_s1 + $0x3c0] ss:$16 sps:$4 sm:$0xff]   ;;  %v3207_v60 = vld [vmem:[%s4670_s1 + $0x14c] ss:$16 sps:$4 sm:$0xff]  }
  0x20   :  { %1700 = vmatpush1.bf16.msra.mxu0 %v3093_v31  ;;  %1660 = vmatprep.subr.bf16.mxu1 %v3094_v32  ;;  %v3760_v3 = vcombine.high %v344_v62, %v344_v62  ;;  %v3136_v10 = vld [vmem:[%s4670_s1 + $0x1e4] ss:$16 sps:$4 sm:$0xff]   ;;  %v3140_v12 = vld [vmem:[%s4670_s1 + $0x1e0] ss:$16 sps:$4 sm:$0xff]   ;;  %v3819_v23 = vrot.slane %v323_v17, %v3719_v49  ;;  %v3165_v31 = vld [vmem:[%s4670_s1 + $0x6c] ss:$16 sps:$4 sm:$0xff]  }
  0x21   :  { %1701 = vmatprep.subr.bf16.mxu0 %v3096_v33  ;;  %1676 = vmatprep.mubr.bf16.mxu1 %v344_v62  ;;  %v3138_v11 = vld [vmem:[%s4670_s1 + $0x3e4] ss:$16 sps:$4 sm:$0xff]   ;;  %v3141_v14 = vld [vmem:[%s4670_s1 + $0x3e0] ss:$16 sps:$4 sm:$0xff]   ;;  %v3163_v33 = vld [vmem:[%s4670_s1 + $0x68] ss:$16 sps:$4 sm:$0xff]  }
  0x22   :  { %1717 = vmatprep.mubr.bf16.mxu0 %v3760_v3  ;;  %v3144_v15 = vld [vmem:[%s4670_s1 + $0x404] ss:$16 sps:$4 sm:$0xff]   ;;  %v3142_v18 = vld [vmem:[%s4670_s1 + $0x400] ss:$16 sps:$4 sm:$0xff]   ;;  %v3229_v17 = vld [vmem:[%s4670_s1 + $0x1c8] ss:$16 sps:$4 sm:$0xff]  }
  0x23   :  { %1661 = vmatpush1.bf16.msra.mxu1 %v3098_v34  ;;  %v3150_v21 = vld [vmem:[%s4670_s1 + $0x424] ss:$16 sps:$4 sm:$0xff]   ;;  %v3148_v24 = vld [vmem:[%s4670_s1 + $0x420] ss:$16 sps:$4 sm:$0xff]  }
  0x24   :  { %1702 = vmatpush1.bf16.msra.mxu0 %v3099_v35  ;;  %1662 = vmatprep.subr.bf16.mxu1 %v3100_v39  ;;  %v3156_v26 = vld [vmem:[%s4670_s1 + $0x444] ss:$16 sps:$4 sm:$0xff]   ;;  %v3154_v28 = vld [vmem:[%s4670_s1 + $0x440] ss:$16 sps:$4 sm:$0xff]   ;;  %v3171_v35 = vld [vmem:[%s4670_s1 + $0x8c] ss:$16 sps:$4 sm:$0xff]  }
  0x25   :  { %1703 = vmatprep.subr.bf16.mxu0 %v3102_v40  ;;  %v3162_v30 = vld [vmem:[%s4670_s1 + $0x464] ss:$16 sps:$4 sm:$0xff]   ;;  %v3160_v32 = vld [vmem:[%s4670_s1 + $0x460] ss:$16 sps:$4 sm:$0xff]   ;;  %v3177_v39 = vld [vmem:[%s4670_s1 + $0xac] ss:$16 sps:$4 sm:$0xff]  }
  0x26   :  { %v3168_v34 = vld [vmem:[%s4670_s1 + $0x484] ss:$16 sps:$4 sm:$0xff]   ;;  %v3166_v36 = vld [vmem:[%s4670_s1 + $0x480] ss:$16 sps:$4 sm:$0xff]  }
  0x27   :  { %1663 = vmatpush1.bf16.msra.mxu1 %v3104_v41  ;;  %v3174_v38 = vld [vmem:[%s4670_s1 + $0x4a4] ss:$16 sps:$4 sm:$0xff]   ;;  %v3172_v40 = vld [vmem:[%s4670_s1 + $0x4a0] ss:$16 sps:$4 sm:$0xff]   ;;  %v3175_v41 = vld [vmem:[%s4670_s1 + $0xa8] ss:$16 sps:$4 sm:$0xff]  }
  0x28   :  { %1704 = vmatpush1.bf16.msra.mxu0 %v3105_v44  ;;  %1664 = vmatprep.subr.bf16.mxu1 %v3106_v45  ;;  %v3180_v43 = vld [vmem:[%s4670_s1 + $0x4c4] ss:$16 sps:$4 sm:$0xff]   ;;  %v3183_v44 = vld [vmem:[%s4670_s1 + $0xcc] ss:$16 sps:$4 sm:$0xff]   ;;  %v3178_v45 = vld [vmem:[%s4670_s1 + $0x4c0] ss:$16 sps:$4 sm:$0xff]  }
  0x29   :  { %1705 = vmatprep.subr.bf16.mxu0 %v3108_v46  ;;  %v3181_v46 = vld [vmem:[%s4670_s1 + $0xc8] ss:$16 sps:$4 sm:$0xff]   ;;  %v3184_v49 = vld [vmem:[%s4670_s1 + $0x4e0] ss:$16 sps:$4 sm:$0xff]   ;;  %v3198_v55 = vld [vmem:[%s4670_s1 + $0x524] ss:$16 sps:$4 sm:$0xff]  }
  0x2a   :  { %v3204_v59 = vld [vmem:[%s4670_s1 + $0x544] ss:$16 sps:$4 sm:$0xff]  }
  0x2b   :  { %1665 = vmatpush1.bf16.msra.mxu1 %v3110_v47  ;;  %v3186_v47 = vld [vmem:[%s4670_s1 + $0x4e4] ss:$16 sps:$4 sm:$0xff]  }
  0x2c   :  { %1706 = vmatpush1.bf16.msra.mxu0 %v3111_v48  ;;  %1666 = vmatprep.subr.bf16.mxu1 %v3112_v50  ;;  %v3189_v48 = vld [vmem:[%s4670_s1 + $0xec] ss:$16 sps:$4 sm:$0xff]   ;;  %v3187_v50 = vld [vmem:[%s4670_s1 + $0xe8] ss:$16 sps:$4 sm:$0xff]  }
  0x2d   :  { %1707 = vmatprep.subr.bf16.mxu0 %v3114_v51  ;;  %v3192_v51 = vld [vmem:[%s4670_s1 + $0x504] ss:$16 sps:$4 sm:$0xff]  }
  0x2f   :  { %1667 = vmatpush1.bf16.msra.mxu1 %v3116_v53  ;;  %v3190_v53 = vld [vmem:[%s4670_s1 + $0x500] ss:$16 sps:$4 sm:$0xff]  }
  0x30   :  { %1708 = vmatpush1.bf16.msra.mxu0 %v3117_v56  ;;  %1668 = vmatprep.subr.bf16.mxu1 %v3118_v57  ;;  %v3201_v56 = vld [vmem:[%s4670_s1 + $0x12c] ss:$16 sps:$4 sm:$0xff]   ;;  %v3196_v57 = vld [vmem:[%s4670_s1 + $0x520] ss:$16 sps:$4 sm:$0xff]  }
  0x31   :  { %1709 = vmatprep.subr.bf16.mxu0 %v3120_v58  ;;  %v3199_v58 = vld [vmem:[%s4670_s1 + $0x128] ss:$16 sps:$4 sm:$0xff]  }
  0x33   :  { %1669 = vmatpush1.bf16.msra.mxu1 %v3122_v61  ;;  %v3202_v61 = vld [vmem:[%s4670_s1 + $0x540] ss:$16 sps:$4 sm:$0xff]  }
  0x34   :  { %1710 = vmatpush1.bf16.msra.mxu0 %v3123_v0  ;;  %1670 = vmatprep.subr.bf16.mxu1 %v3124_v1  ;;  %v3210_v0 = vld [vmem:[%s4670_s1 + $0x564] ss:$16 sps:$4 sm:$0xff]   ;;  %v3213_v1 = vld [vmem:[%s4670_s1 + $0x16c] ss:$16 sps:$4 sm:$0xff]  }
  0x35   :  { %1711 = vmatprep.subr.bf16.mxu0 %v3126_v2  ;;  %v3208_v2 = vld [vmem:[%s4670_s1 + $0x560] ss:$16 sps:$4 sm:$0xff]  }
  0x37   :  { %1671 = vmatpush1.bf16.msra.mxu1 %v3128_v4  ;;  %v3211_v4 = vld [vmem:[%s4670_s1 + $0x168] ss:$16 sps:$4 sm:$0xff]  }
  0x38   :  { %1712 = vmatpush1.bf16.msra.mxu0 %v3129_v5  ;;  %1672 = vmatprep.subr.bf16.mxu1 %v3130_v6  ;;  %v3216_v5 = vld [vmem:[%s4670_s1 + $0x584] ss:$16 sps:$4 sm:$0xff]   ;;  %v3219_v6 = vld [vmem:[%s4670_s1 + $0x18c] ss:$16 sps:$4 sm:$0xff]  }
  0x39   :  { %1713 = vmatprep.subr.bf16.mxu0 %v3132_v7  ;;  %v3214_v7 = vld [vmem:[%s4670_s1 + $0x580] ss:$16 sps:$4 sm:$0xff]  }
  0x3b   :  { %1673 = vmatpush1.bf16.msra.mxu1 %v3134_v8  ;;  %v3217_v8 = vld [vmem:[%s4670_s1 + $0x188] ss:$16 sps:$4 sm:$0xff]  }
  0x3c   :  { %1714 = vmatpush1.bf16.msra.mxu0 %v3135_v9  ;;  %1674 = vmatprep.subr.bf16.mxu1 %v3136_v10  ;;  %v3222_v9 = vld [vmem:[%s4670_s1 + $0x5a4] ss:$16 sps:$4 sm:$0xff]   ;;  %v3225_v10 = vld [vmem:[%s4670_s1 + $0x1ac] ss:$16 sps:$4 sm:$0xff]  }
  0x3d   :  { %1715 = vmatprep.subr.bf16.mxu0 %v3138_v11  ;;  %v3220_v11 = vld [vmem:[%s4670_s1 + $0x5a0] ss:$16 sps:$4 sm:$0xff]  }
  0x3f   :  { %1675 = vmatpush1.bf16.msra.mxu1 %v3140_v12  ;;  %v3223_v12 = vld [vmem:[%s4670_s1 + $0x1a8] ss:$16 sps:$4 sm:$0xff]  }
  0x40   :  { %1716 = vmatpush1.bf16.msra.mxu0 %v3141_v14  ;;  %1808 = vmatprep.subr.bf16.mxu1 %v3147_v16  ;;  %v3228_v14 = vld [vmem:[%s4670_s1 + $0x5c4] ss:$16 sps:$4 sm:$0xff]   ;;  %v3226_v16 = vld [vmem:[%s4670_s1 + $0x5c0] ss:$16 sps:$4 sm:$0xff]  }
  0x41   :  { %1726 = vmatprep.subr.bf16.mxu0 %v3144_v15  ;;  %v3231_v15 = vld [vmem:[%s4670_s1 + $0x1cc] ss:$16 sps:$4 sm:$0xff]  }
  0x42   :  { %1677 = vmatmul.mubr.bf16.vlgmr.msra.gmra.mrb[0].mxu1 %v3791_v13 }
  0x43   :  { %1718 = vmatmul.mubr.bf16.vlgmr.msra.gmra.mrb[0].mxu0 %v3807_v19  ;;  %1809 = vmatpush1.bf16.msra.mxu1 %v3145_v20  ;;  %v3237_v20 = vld [vmem:[%s4670_s1 + $0x1ec] ss:$16 sps:$4 sm:$0xff]  }
  0x44   :  { %1727 = vmatpush1.bf16.msra.mxu0 %v3142_v18  ;;  %1810 = vmatprep.subr.bf16.mxu1 %v3153_v22  ;;  %v3234_v18 = vld [vmem:[%s4670_s1 + $0x5e4] ss:$16 sps:$4 sm:$0xff]   ;;  %v3235_v22 = vld [vmem:[%s4670_s1 + $0x1e8] ss:$16 sps:$4 sm:$0xff]  }
  0x45   :  { %1728 = vmatprep.subr.bf16.mxu0 %v3150_v21  ;;  %1758 = vmatprep.mubr.bf16.mxu0 %v3819_v23  ;;  %v3232_v21 = vld [vmem:[%s4670_s1 + $0x5e0] ss:$16 sps:$4 sm:$0xff]  }
  0x46   :  { %1840 = vmatprep.mubr.bf16.mxu1 %v344_v62  ;;  %v3205_v62 = vld [vmem:[%s4670_s1 + $0x148] ss:$16 sps:$4 sm:$0xff]  }
  0x47   :  { %1811 = vmatpush1.bf16.msra.mxu1 %v3151_v25  ;;  %v3244_v25 = vld [vmem:[%s4670_s1 + $0x20c] ss:$16 sps:$4 sm:$0xff]  }
  0x48   :  { %1729 = vmatpush1.bf16.msra.mxu0 %v3148_v24  ;;  %1812 = vmatprep.subr.bf16.mxu1 %v3159_v27  ;;  %v3241_v24 = vld [vmem:[%s4670_s1 + $0x604] ss:$16 sps:$4 sm:$0xff]   ;;  %v3242_v27 = vld [vmem:[%s4670_s1 + $0x208] ss:$16 sps:$4 sm:$0xff]  }
  0x49   :  { %1730 = vmatprep.subr.bf16.mxu0 %v3156_v26  ;;  %v3239_v26 = vld [vmem:[%s4670_s1 + $0x600] ss:$16 sps:$4 sm:$0xff]  }
  0x4b   :  { %1813 = vmatpush1.bf16.msra.mxu1 %v3157_v29  ;;  %v3250_v29 = vld [vmem:[%s4670_s1 + $0x22c] ss:$16 sps:$4 sm:$0xff]  }
  0x4c   :  { %1731 = vmatpush1.bf16.msra.mxu0 %v3154_v28  ;;  %1814 = vmatprep.subr.bf16.mxu1 %v3165_v31  ;;  %v3247_v28 = vld [vmem:[%s4670_s1 + $0x624] ss:$16 sps:$4 sm:$0xff]   ;;  %v3245_v31 = vld [vmem:[%s4670_s1 + $0x620] ss:$16 sps:$4 sm:$0xff]  }
  0x4d   :  { %1732 = vmatprep.subr.bf16.mxu0 %v3162_v30  ;;  %v4018_v30 = vcombine.high %v3819_v23, %v3819_v23 }
  0x4f   :  { %1815 = vmatpush1.bf16.msra.mxu1 %v3163_v33  ;;  %v3253_v33 = vld [vmem:[%s4670_s1 + $0x644] ss:$16 sps:$4 sm:$0xff]  }
  0x50   :  { %1733 = vmatpush1.bf16.msra.mxu0 %v3160_v32  ;;  %1816 = vmatprep.subr.bf16.mxu1 %v3171_v35  ;;  %v3248_v32 = vld [vmem:[%s4670_s1 + $0x228] ss:$16 sps:$4 sm:$0xff]  }
  0x51   :  { %1734 = vmatprep.subr.bf16.mxu0 %v3168_v34  ;;  %v3251_v34 = vld [vmem:[%s4670_s1 + $0x640] ss:$16 sps:$4 sm:$0xff]   ;;  %v3254_v35 = vld [vmem:[%s4670_s1 + $0x248] ss:$16 sps:$4 sm:$0xff]  }
  0x53   :  { %1817 = vmatpush1.bf16.msra.mxu1 %v3169_v37  ;;  %v3257_v37 = vld [vmem:[%s4670_s1 + $0x660] ss:$16 sps:$4 sm:$0xff]  }
  0x54   :  { %1735 = vmatpush1.bf16.msra.mxu0 %v3166_v36  ;;  %1818 = vmatprep.subr.bf16.mxu1 %v3177_v39  ;;  %v3259_v36 = vld [vmem:[%s4670_s1 + $0x664] ss:$16 sps:$4 sm:$0xff]  }
  0x55   :  { %1736 = vmatprep.subr.bf16.mxu0 %v3174_v38  ;;  %v3260_v38 = vld [vmem:[%s4670_s1 + $0x268] ss:$16 sps:$4 sm:$0xff]   ;;  %v3265_v39 = vld [vmem:[%s4670_s1 + $0x684] ss:$16 sps:$4 sm:$0xff]  }
  0x57   :  { %1819 = vmatpush1.bf16.msra.mxu1 %v3175_v41  ;;  %v3263_v41 = vld [vmem:[%s4670_s1 + $0x680] ss:$16 sps:$4 sm:$0xff]  }
  0x58   :  { %1737 = vmatpush1.bf16.msra.mxu0 %v3172_v40  ;;  %1820 = vmatprep.subr.bf16.mxu1 %v3183_v44  ;;  %v3268_v40 = vld [vmem:[%s4670_s1 + $0x28c] ss:$16 sps:$4 sm:$0xff]   ;;  %v3271_v44 = vld [vmem:[%s4670_s1 + $0x6a4] ss:$16 sps:$4 sm:$0xff]  }
  0x59   :  { %1738 = vmatprep.subr.bf16.mxu0 %v3180_v43  ;;  %v3266_v43 = vld [vmem:[%s4670_s1 + $0x288] ss:$16 sps:$4 sm:$0xff]  }
  0x5b   :  { %1821 = vmatpush1.bf16.msra.mxu1 %v3181_v46  ;;  %v3269_v46 = vld [vmem:[%s4670_s1 + $0x6a0] ss:$16 sps:$4 sm:$0xff]  }
  0x5c   :  { %1739 = vmatpush1.bf16.msra.mxu0 %v3178_v45  ;;  %1822 = vmatprep.subr.bf16.mxu1 %v3189_v48  ;;  %v3274_v45 = vld [vmem:[%s4670_s1 + $0x2ac] ss:$16 sps:$4 sm:$0xff]   ;;  %v3277_v48 = vld [vmem:[%s4670_s1 + $0x6c4] ss:$16 sps:$4 sm:$0xff]  }
  0x5d   :  { %1740 = vmatprep.subr.bf16.mxu0 %v3186_v47  ;;  %v3272_v47 = vld [vmem:[%s4670_s1 + $0x2a8] ss:$16 sps:$4 sm:$0xff]  }
  0x5f   :  { %1823 = vmatpush1.bf16.msra.mxu1 %v3187_v50  ;;  %v3275_v50 = vld [vmem:[%s4670_s1 + $0x6c0] ss:$16 sps:$4 sm:$0xff]  }
  0x60   :  { %1741 = vmatpush1.bf16.msra.mxu0 %v3184_v49  ;;  %1824 = vmatprep.subr.bf16.mxu1 %v3195_v52  ;;  %v3280_v49 = vld [vmem:[%s4670_s1 + $0x2cc] ss:$16 sps:$4 sm:$0xff]   ;;  %v3283_v52 = vld [vmem:[%s4670_s1 + $0x6e4] ss:$16 sps:$4 sm:$0xff]  }
  0x61   :  { %1742 = vmatprep.subr.bf16.mxu0 %v3192_v51  ;;  %v3278_v51 = vld [vmem:[%s4670_s1 + $0x2c8] ss:$16 sps:$4 sm:$0xff]  }
  0x63   :  { %1825 = vmatpush1.bf16.msra.mxu1 %v3193_v54  ;;  %v3281_v54 = vld [vmem:[%s4670_s1 + $0x6e0] ss:$16 sps:$4 sm:$0xff]  }
  0x64   :  { %1743 = vmatpush1.bf16.msra.mxu0 %v3190_v53  ;;  %1826 = vmatprep.subr.bf16.mxu1 %v3201_v56  ;;  %v3286_v53 = vld [vmem:[%s4670_s1 + $0x2ec] ss:$16 sps:$4 sm:$0xff]   ;;  %v3289_v56 = vld [vmem:[%s4670_s1 + $0x704] ss:$16 sps:$4 sm:$0xff]  }
  0x65   :  { %1744 = vmatprep.subr.bf16.mxu0 %v3198_v55  ;;  %v3284_v55 = vld [vmem:[%s4670_s1 + $0x2e8] ss:$16 sps:$4 sm:$0xff]  }
  0x67   :  { %1827 = vmatpush1.bf16.msra.mxu1 %v3199_v58  ;;  %v3287_v58 = vld [vmem:[%s4670_s1 + $0x700] ss:$16 sps:$4 sm:$0xff]  }
  0x68   :  { %1745 = vmatpush1.bf16.msra.mxu0 %v3196_v57  ;;  %1828 = vmatprep.subr.bf16.mxu1 %v3207_v60  ;;  %v3292_v57 = vld [vmem:[%s4670_s1 + $0x30c] ss:$16 sps:$4 sm:$0xff]   ;;  %v3295_v60 = vld [vmem:[%s4670_s1 + $0x724] ss:$16 sps:$4 sm:$0xff]  }
  0x69   :  { %1746 = vmatprep.subr.bf16.mxu0 %v3204_v59  ;;  %v3290_v59 = vld [vmem:[%s4670_s1 + $0x308] ss:$16 sps:$4 sm:$0xff]  }
  0x6b   :  { %1829 = vmatpush1.bf16.msra.mxu1 %v3205_v62  ;;  %v3293_v62 = vld [vmem:[%s4670_s1 + $0x720] ss:$16 sps:$4 sm:$0xff]  }
  0x6c   :  { %1747 = vmatpush1.bf16.msra.mxu0 %v3202_v61  ;;  %1830 = vmatprep.subr.bf16.mxu1 %v3213_v1  ;;  %v3298_v61 = vld [vmem:[%s4670_s1 + $0x32c] ss:$16 sps:$4 sm:$0xff]   ;;  %v3301_v1 = vld [vmem:[%s4670_s1 + $0x744] ss:$16 sps:$4 sm:$0xff]  }
  0x6d   :  { %1748 = vmatprep.subr.bf16.mxu0 %v3210_v0  ;;  %v3296_v0 = vld [vmem:[%s4670_s1 + $0x328] ss:$16 sps:$4 sm:$0xff]  }
  0x6f   :  { %1831 = vmatpush1.bf16.msra.mxu1 %v3211_v4  ;;  %v3299_v4 = vld [vmem:[%s4670_s1 + $0x740] ss:$16 sps:$4 sm:$0xff]  }
  0x70   :  { %1749 = vmatpush1.bf16.msra.mxu0 %v3208_v2  ;;  %1832 = vmatprep.subr.bf16.mxu1 %v3219_v6  ;;  %v3304_v2 = vld [vmem:[%s4670_s1 + $0x34c] ss:$16 sps:$4 sm:$0xff]   ;;  %v3307_v6 = vld [vmem:[%s4670_s1 + $0x764] ss:$16 sps:$4 sm:$0xff]  }
  0x71   :  { %1750 = vmatprep.subr.bf16.mxu0 %v3216_v5  ;;  %v3302_v5 = vld [vmem:[%s4670_s1 + $0x348] ss:$16 sps:$4 sm:$0xff]  }
  0x73   :  { %1833 = vmatpush1.bf16.msra.mxu1 %v3217_v8  ;;  %v3305_v8 = vld [vmem:[%s4670_s1 + $0x760] ss:$16 sps:$4 sm:$0xff]  }
  0x74   :  { %1751 = vmatpush1.bf16.msra.mxu0 %v3214_v7  ;;  %1834 = vmatprep.subr.bf16.mxu1 %v3225_v10  ;;  %v3310_v7 = vld [vmem:[%s4670_s1 + $0x36c] ss:$16 sps:$4 sm:$0xff]   ;;  %v3313_v10 = vld [vmem:[%s4670_s1 + $0x784] ss:$16 sps:$4 sm:$0xff]  }
  0x75   :  { %1752 = vmatprep.subr.bf16.mxu0 %v3222_v9  ;;  %v3308_v9 = vld [vmem:[%s4670_s1 + $0x368] ss:$16 sps:$4 sm:$0xff]  }
  0x77   :  { %1835 = vmatpush1.bf16.msra.mxu1 %v3223_v12  ;;  %v3311_v12 = vld [vmem:[%s4670_s1 + $0x780] ss:$16 sps:$4 sm:$0xff]  }
  0x78   :  { %1753 = vmatpush1.bf16.msra.mxu0 %v3220_v11  ;;  %1836 = vmatprep.subr.bf16.mxu1 %v3231_v15  ;;  %v3316_v11 = vld [vmem:[%s4670_s1 + $0x38c] ss:$16 sps:$4 sm:$0xff]   ;;  %v3319_v15 = vld [vmem:[%s4670_s1 + $0x7a4] ss:$16 sps:$4 sm:$0xff]  }
  0x79   :  { %1754 = vmatprep.subr.bf16.mxu0 %v3228_v14  ;;  %v3314_v14 = vld [vmem:[%s4670_s1 + $0x388] ss:$16 sps:$4 sm:$0xff]  }
  0x7b   :  { %1837 = vmatpush1.bf16.msra.mxu1 %v3229_v17  ;;  %v3317_v17 = vld [vmem:[%s4670_s1 + $0x7a0] ss:$16 sps:$4 sm:$0xff]  }
  0x7c   :  { %1755 = vmatpush1.bf16.msra.mxu0 %v3226_v16  ;;  %1838 = vmatprep.subr.bf16.mxu1 %v3237_v20  ;;  %v3322_v16 = vld [vmem:[%s4670_s1 + $0x3ac] ss:$16 sps:$4 sm:$0xff]   ;;  %v3325_v20 = vld [vmem:[%s4670_s1 + $0x7c4] ss:$16 sps:$4 sm:$0xff]  }
  0x7d   :  { %1756 = vmatprep.subr.bf16.mxu0 %v3234_v18  ;;  %v3320_v18 = vld [vmem:[%s4670_s1 + $0x3a8] ss:$16 sps:$4 sm:$0xff]  }
  0x7f   :  { %1839 = vmatpush1.bf16.msra.mxu1 %v3235_v22  ;;  %v3323_v22 = vld [vmem:[%s4670_s1 + $0x7c0] ss:$16 sps:$4 sm:$0xff]  }
  0x80   :  { %1757 = vmatpush1.bf16.msra.mxu0 %v3232_v21  ;;  %1849 = vmatprep.subr.bf16.mxu1 %v3244_v25  ;;  %v3328_v21 = vld [vmem:[%s4670_s1 + $0x3cc] ss:$16 sps:$4 sm:$0xff]   ;;  %v3331_v25 = vld [vmem:[%s4670_s1 + $0x7e4] ss:$16 sps:$4 sm:$0xff]  }
  0x81   :  { %1767 = vmatprep.subr.bf16.mxu0 %v3241_v24  ;;  %v3326_v24 = vld [vmem:[%s4670_s1 + $0x3c8] ss:$16 sps:$4 sm:$0xff]  }
  0x82   :  { %1841 = vmatmul.mubr.bf16.vlgmr.msra.gmra.mrb[4].mxu1 %v3791_v13  ;;  %v3256_v13 = vld [vmem:[%s4670_s1 + $0x24c] ss:$16 sps:$4 sm:$0xff]  }
  0x83   :  { %1759 = vmatmul.mubr.bf16.vlgmr.msra.gmra.mrb[0].mxu0 %v3749_v63  ;;  %1850 = vmatpush1.bf16.msra.mxu1 %v3242_v27  ;;  %v3329_v27 = vld [vmem:[%s4670_s1 + $0x7e0] ss:$16 sps:$4 sm:$0xff]  }
  0x84   :  { %1768 = vmatpush1.bf16.msra.mxu0 %v3239_v26  ;;  %1851 = vmatprep.subr.bf16.mxu1 %v3250_v29  ;;  %v3334_v26 = vld [vmem:[%s4670_s1 + $0x3ec] ss:$16 sps:$4 sm:$0xff]  }
  0x85   :  { %1769 = vmatprep.subr.bf16.mxu0 %v3247_v28  ;;  %1799 = vmatprep.mubr.bf16.mxu0 %v4018_v30  ;;  %v3332_v28 = vld [vmem:[%s4670_s1 + $0x3e8] ss:$16 sps:$4 sm:$0xff]   ;;  %v3337_v29 = vld [vmem:[%s4670_s1 + $0x40c] ss:$16 sps:$4 sm:$0xff]  }
  0x86   :  { %1881 = vmatprep.mubr.bf16.mxu1 %v3760_v3  ;;  %v3262_v3 = vld [vmem:[%s4670_s1 + $0x26c] ss:$16 sps:$4 sm:$0xff]  }
  0x87   :  { %1852 = vmatpush1.bf16.msra.mxu1 %v3248_v32  ;;  %v3335_v32 = vld [vmem:[%s4670_s1 + $0x408] ss:$16 sps:$4 sm:$0xff]  }
  0x88   :  { %1770 = vmatpush1.bf16.msra.mxu0 %v3245_v31  ;;  %1853 = vmatprep.subr.bf16.mxu1 %v3256_v13  ;;  %v4203_v31 = vcombine.high %v3749_v63, %v3749_v63  ;;  %v3338_v13 = vld [vmem:[%s4670_s1 + $0x428] ss:$16 sps:$4 sm:$0xff]  }
  0x89   :  { %1771 = vmatprep.subr.bf16.mxu0 %v3253_v33  ;;  %v3340_v33 = vld [vmem:[%s4670_s1 + $0x42c] ss:$16 sps:$4 sm:$0xff]  }
  0x8b   :  { %1854 = vmatpush1.bf16.msra.mxu1 %v3254_v35  ;;  %v3431_v35 = vld [vmem:[%s4672_s3] ss:$8 sps:$4 sm:$0xff]  }
  0x8c   :  { %1772 = vmatpush1.bf16.msra.mxu0 %v3251_v34  ;;  %1855 = vmatprep.subr.bf16.mxu1 %v3262_v3  ;;  %v3343_v34 = vld [vmem:[%s4670_s1 + $0x44c] ss:$16 sps:$4 sm:$0xff]   ;;  %v3341_v3 = vld [vmem:[%s4670_s1 + $0x448] ss:$16 sps:$4 sm:$0xff]  }
  0x8d   :  { %1773 = vmatprep.subr.bf16.mxu0 %v3259_v36  ;;  %v3436_v36 = vld [vmem:[%s4672_s3 + $0x14] ss:$8 sps:$4 sm:$0xff]  }
  0x8f   :  { %1856 = vmatpush1.bf16.msra.mxu1 %v3260_v38  ;;  %v3439_v38 = vld [vmem:[%s4672_s3 + $0x24] ss:$8 sps:$4 sm:$0xff]  }
  0x90   :  { %1774 = vmatpush1.bf16.msra.mxu0 %v3257_v37  ;;  %1857 = vmatprep.subr.bf16.mxu1 %v3268_v40  ;;  %v3434_v37 = vld [vmem:[%s4672_s3 + $0x10] ss:$8 sps:$4 sm:$0xff]   ;;  %v3349_v40 = vld [vmem:[%s4670_s1 + $0x48c] ss:$16 sps:$4 sm:$0xff]  }
  0x91   :  { %1775 = vmatprep.subr.bf16.mxu0 %v3265_v39  ;;  %v3344_v39 = vld [vmem:[%s4670_s1 + $0x468] ss:$16 sps:$4 sm:$0xff]  }
  0x93   :  { %1858 = vmatpush1.bf16.msra.mxu1 %v3266_v43  ;;  %v3442_v43 = vld [vmem:[%s4672_s3 + $0x34] ss:$8 sps:$4 sm:$0xff]  }
  0x94   :  { %1776 = vmatpush1.bf16.msra.mxu0 %v3263_v41  ;;  %1859 = vmatprep.subr.bf16.mxu1 %v3274_v45  ;;  %v3437_v41 = vld [vmem:[%s4672_s3 + $0x20] ss:$8 sps:$4 sm:$0xff]   ;;  %v3352_v45 = vld [vmem:[%s4670_s1 + $0x4ac] ss:$16 sps:$4 sm:$0xff]  }
  0x95   :  { %1777 = vmatprep.subr.bf16.mxu0 %v3271_v44  ;;  %v3347_v44 = vld [vmem:[%s4670_s1 + $0x488] ss:$16 sps:$4 sm:$0xff]  }
  0x97   :  { %1860 = vmatpush1.bf16.msra.mxu1 %v3272_v47  ;;  %v3445_v47 = vld [vmem:[%s4672_s3 + $0x44] ss:$8 sps:$4 sm:$0xff]  }
  0x98   :  { %1778 = vmatpush1.bf16.msra.mxu0 %v3269_v46  ;;  %1861 = vmatprep.subr.bf16.mxu1 %v3280_v49  ;;  %v3440_v46 = vld [vmem:[%s4672_s3 + $0x30] ss:$8 sps:$4 sm:$0xff]   ;;  %v3355_v49 = vld [vmem:[%s4670_s1 + $0x4cc] ss:$16 sps:$4 sm:$0xff]  }
  0x99   :  { %1779 = vmatprep.subr.bf16.mxu0 %v3277_v48  ;;  %v3350_v48 = vld [vmem:[%s4670_s1 + $0x4a8] ss:$16 sps:$4 sm:$0xff]  }
  0x9b   :  { %1862 = vmatpush1.bf16.msra.mxu1 %v3278_v51  ;;  %v3448_v51 = vld [vmem:[%s4672_s3 + $0x54] ss:$8 sps:$4 sm:$0xff]  }
  0x9c   :  { %1780 = vmatpush1.bf16.msra.mxu0 %v3275_v50  ;;  %1863 = vmatprep.subr.bf16.mxu1 %v3286_v53  ;;  %v3443_v50 = vld [vmem:[%s4672_s3 + $0x40] ss:$8 sps:$4 sm:$0xff]   ;;  %v3446_v53 = vld [vmem:[%s4672_s3 + $0x50] ss:$8 sps:$4 sm:$0xff]  }
  0x9d   :  { %1781 = vmatprep.subr.bf16.mxu0 %v3283_v52  ;;  %v3353_v52 = vld [vmem:[%s4670_s1 + $0x4c8] ss:$16 sps:$4 sm:$0xff]  }
  0x9f   :  { %1864 = vmatpush1.bf16.msra.mxu1 %v3284_v55  ;;  %v3451_v55 = vld [vmem:[%s4672_s3 + $0x64] ss:$8 sps:$4 sm:$0xff]  }
  0xa0   :  { %1782 = vmatpush1.bf16.msra.mxu0 %v3281_v54  ;;  %1865 = vmatprep.subr.bf16.mxu1 %v3292_v57  ;;  %v3358_v54 = vld [vmem:[%s4670_s1 + $0x4ec] ss:$16 sps:$4 sm:$0xff]   ;;  %v3449_v57 = vld [vmem:[%s4672_s3 + $0x60] ss:$8 sps:$4 sm:$0xff]  }
  0xa1   :  { %1783 = vmatprep.subr.bf16.mxu0 %v3289_v56  ;;  %v3356_v56 = vld [vmem:[%s4670_s1 + $0x4e8] ss:$16 sps:$4 sm:$0xff]  }
  0xa3   :  { %1866 = vmatpush1.bf16.msra.mxu1 %v3290_v59  ;;  %v3454_v59 = vld [vmem:[%s4672_s3 + $0x74] ss:$8 sps:$4 sm:$0xff]  }
  0xa4   :  { %1784 = vmatpush1.bf16.msra.mxu0 %v3287_v58  ;;  %1867 = vmatprep.subr.bf16.mxu1 %v3298_v61  ;;  %v3361_v58 = vld [vmem:[%s4670_s1 + $0x50c] ss:$16 sps:$4 sm:$0xff]   ;;  %v3452_v61 = vld [vmem:[%s4672_s3 + $0x70] ss:$8 sps:$4 sm:$0xff]  }
  0xa5   :  { %1785 = vmatprep.subr.bf16.mxu0 %v3295_v60  ;;  %v3359_v60 = vld [vmem:[%s4670_s1 + $0x508] ss:$16 sps:$4 sm:$0xff]  }
  0xa7   :  { %1868 = vmatpush1.bf16.msra.mxu1 %v3296_v0  ;;  %v3457_v0 = vld [vmem:[%s4672_s3 + $0x84] ss:$8 sps:$4 sm:$0xff]  }
  0xa8   :  { %1786 = vmatpush1.bf16.msra.mxu0 %v3293_v62  ;;  %1869 = vmatprep.subr.bf16.mxu1 %v3304_v2  ;;  %v3364_v62 = vld [vmem:[%s4670_s1 + $0x52c] ss:$16 sps:$4 sm:$0xff]   ;;  %v3455_v2 = vld [vmem:[%s4672_s3 + $0x80] ss:$8 sps:$4 sm:$0xff]  }
  0xa9   :  { %1787 = vmatprep.subr.bf16.mxu0 %v3301_v1  ;;  %v3362_v1 = vld [vmem:[%s4670_s1 + $0x528] ss:$16 sps:$4 sm:$0xff]  }
  0xab   :  { %1870 = vmatpush1.bf16.msra.mxu1 %v3302_v5  ;;  %v3460_v5 = vld [vmem:[%s4672_s3 + $0x94] ss:$8 sps:$4 sm:$0xff]  }
  0xac   :  { %1788 = vmatpush1.bf16.msra.mxu0 %v3299_v4  ;;  %1871 = vmatprep.subr.bf16.mxu1 %v3310_v7  ;;  %v3367_v4 = vld [vmem:[%s4670_s1 + $0x54c] ss:$16 sps:$4 sm:$0xff]   ;;  %v3458_v7 = vld [vmem:[%s4672_s3 + $0x90] ss:$8 sps:$4 sm:$0xff]  }
  0xad   :  { %1789 = vmatprep.subr.bf16.mxu0 %v3307_v6  ;;  %v3365_v6 = vld [vmem:[%s4670_s1 + $0x548] ss:$16 sps:$4 sm:$0xff]  }
  0xaf   :  { %1872 = vmatpush1.bf16.msra.mxu1 %v3308_v9  ;;  %v3463_v9 = vld [vmem:[%s4672_s3 + $0xa4] ss:$8 sps:$4 sm:$0xff]  }
  0xb0   :  { %1790 = vmatpush1.bf16.msra.mxu0 %v3305_v8  ;;  %1873 = vmatprep.subr.bf16.mxu1 %v3316_v11  ;;  %v3370_v8 = vld [vmem:[%s4670_s1 + $0x56c] ss:$16 sps:$4 sm:$0xff]   ;;  %v3461_v11 = vld [vmem:[%s4672_s3 + $0xa0] ss:$8 sps:$4 sm:$0xff]  }
  0xb1   :  { %1791 = vmatprep.subr.bf16.mxu0 %v3313_v10  ;;  %v3368_v10 = vld [vmem:[%s4670_s1 + $0x568] ss:$16 sps:$4 sm:$0xff]  }
  0xb3   :  { %1874 = vmatpush1.bf16.msra.mxu1 %v3314_v14  ;;  %v3466_v14 = vld [vmem:[%s4672_s3 + $0xb4] ss:$8 sps:$4 sm:$0xff]  }
  0xb4   :  { %1792 = vmatpush1.bf16.msra.mxu0 %v3311_v12  ;;  %1875 = vmatprep.subr.bf16.mxu1 %v3322_v16  ;;  %v3373_v12 = vld [vmem:[%s4670_s1 + $0x58c] ss:$16 sps:$4 sm:$0xff]   ;;  %v3464_v16 = vld [vmem:[%s4672_s3 + $0xb0] ss:$8 sps:$4 sm:$0xff]  }
  0xb5   :  { %1793 = vmatprep.subr.bf16.mxu0 %v3319_v15  ;;  %v3371_v15 = vld [vmem:[%s4670_s1 + $0x588] ss:$16 sps:$4 sm:$0xff]  }
  0xb7   :  { %1876 = vmatpush1.bf16.msra.mxu1 %v3320_v18  ;;  %v3469_v18 = vld [vmem:[%s4672_s3 + $0xc4] ss:$8 sps:$4 sm:$0xff]  }
  0xb8   :  { %1794 = vmatpush1.bf16.msra.mxu0 %v3317_v17  ;;  %1877 = vmatprep.subr.bf16.mxu1 %v3328_v21  ;;  %v3376_v17 = vld [vmem:[%s4670_s1 + $0x5ac] ss:$16 sps:$4 sm:$0xff]   ;;  %v3467_v21 = vld [vmem:[%s4672_s3 + $0xc0] ss:$8 sps:$4 sm:$0xff]  }
  0xb9   :  { %1795 = vmatprep.subr.bf16.mxu0 %v3325_v20  ;;  %v3374_v20 = vld [vmem:[%s4670_s1 + $0x5a8] ss:$16 sps:$4 sm:$0xff]  }
  0xbb   :  { %1878 = vmatpush1.bf16.msra.mxu1 %v3326_v24  ;;  %v3472_v24 = vld [vmem:[%s4672_s3 + $0xd4] ss:$8 sps:$4 sm:$0xff]  }
  0xbc   :  { %1796 = vmatpush1.bf16.msra.mxu0 %v3323_v22  ;;  %1879 = vmatprep.subr.bf16.mxu1 %v3334_v26  ;;  %v3379_v22 = vld [vmem:[%s4670_s1 + $0x5cc] ss:$16 sps:$4 sm:$0xff]   ;;  %v3470_v26 = vld [vmem:[%s4672_s3 + $0xd0] ss:$8 sps:$4 sm:$0xff]  }
  0xbd   :  { %1797 = vmatprep.subr.bf16.mxu0 %v3331_v25  ;;  %v3377_v25 = vld [vmem:[%s4670_s1 + $0x5c8] ss:$16 sps:$4 sm:$0xff]  }
  0xbf   :  { %1880 = vmatpush1.bf16.msra.mxu1 %v3332_v28  ;;  %v3380_v28 = vld [vmem:[%s4670_s1 + $0x5e8] ss:$16 sps:$4 sm:$0xff]  }
  0xc0   :  { %1798 = vmatpush1.bf16.msra.mxu0 %v3329_v27  ;;  %1890 = vmatprep.subr.bf16.mxu1 %v3337_v29  ;;  %v3382_v27 = vld [vmem:[%s4670_s1 + $0x5ec] ss:$16 sps:$4 sm:$0xff]  }
  0xc1   :  { %v3385_v29 = vld [vmem:[%s4670_s1 + $0x60c] ss:$16 sps:$4 sm:$0xff]  }
  0xc2   :  { %1882 = vmatmul.mubr.bf16.vlgmr.msra.gmra.mrb[4].mxu1 %v3807_v19  ;;  %v3433_v19 = vld [vmem:[%s4672_s3 + $0x4] ss:$8 sps:$4 sm:$0xff]  }
  0xc3   :  { %1800 = vmatmul.mubr.bf16.vlgmr.msra.gmra.mrb[0].mxu0 %v4203_v31  ;;  %1891 = vmatpush1.bf16.msra.mxu1 %v3335_v32  ;;  %v3383_v32 = vld [vmem:[%s4670_s1 + $0x608] ss:$16 sps:$4 sm:$0xff]  }
  0xc4   :  { %1922 = vmatprep.mubr.bf16.mxu1 %v3819_v23  ;;  %1892 = vmatprep.subr.bf16.mxu1 %v3340_v33  ;;  %v3346_v23 = vld [vmem:[%s4670_s1 + $0x46c] ss:$16 sps:$4 sm:$0xff]  }
  0xc5   :  { %2384 = vmatprep.subr.bf16.mxu0 %v3433_v19  ;;  %v3388_v33 = vld [vmem:[%s4670_s1 + $0x62c] ss:$16 sps:$4 sm:$0xff]  }
  0xc6   :  { %2385 = vmatpush1.bf16.msra.mxu0 %v3431_v35  ;;  %v3389_v35 = vld [vmem:[%s4670_s1 + $0x648] ss:$16 sps:$4 sm:$0xff]   ;;  %v3397_v19 = vld [vmem:[%s4670_s1 + $0x68c] ss:$16 sps:$4 sm:$0xff]  }
  0xc7   :  { %1893 = vmatpush1.bf16.msra.mxu1 %v3338_v13  ;;  %2386 = vmatprep.subr.bf16.mxu0 %v3436_v36  ;;  %v3386_v13 = vld [vmem:[%s4670_s1 + $0x628] ss:$16 sps:$4 sm:$0xff]  }
  0xc8   :  { %1894 = vmatprep.subr.bf16.mxu1 %v3343_v34  ;;  %v3391_v34 = vld [vmem:[%s4670_s1 + $0x64c] ss:$16 sps:$4 sm:$0xff]   ;;  %v3395_v36 = vld [vmem:[%s4670_s1 + $0x688] ss:$16 sps:$4 sm:$0xff]  }
  0xca   :  { %2387 = vmatpush1.bf16.msra.mxu0 %v3434_v37  ;;  %v3403_v37 = vld [vmem:[%s4670_s1 + $0x6cc] ss:$16 sps:$4 sm:$0xff]  }
  0xcb   :  { %1895 = vmatpush1.bf16.msra.mxu1 %v3341_v3  ;;  %2388 = vmatprep.subr.bf16.mxu0 %v3439_v38  ;;  %v3400_v3 = vld [vmem:[%s4670_s1 + $0x6ac] ss:$16 sps:$4 sm:$0xff]  }
  0xcc   :  { %1896 = vmatprep.subr.bf16.mxu1 %v3346_v23  ;;  %v3398_v23 = vld [vmem:[%s4670_s1 + $0x6a8] ss:$16 sps:$4 sm:$0xff]  }
  0xce   :  { %2389 = vmatpush1.bf16.msra.mxu0 %v3437_v41  ;;  %v3473_v41 = vld [vmem:[%s4672_s3 + $0xe0] ss:$8 sps:$4 sm:$0xff]  }
  0xcf   :  { %1897 = vmatpush1.bf16.msra.mxu1 %v3344_v39  ;;  %2390 = vmatprep.subr.bf16.mxu0 %v3442_v43  ;;  %v3475_v39 = vld [vmem:[%s4672_s3 + $0xe4] ss:$8 sps:$4 sm:$0xff]  }
  0xd0   :  { %1898 = vmatprep.subr.bf16.mxu1 %v3349_v40 }
  0xd2   :  { %2391 = vmatpush1.bf16.msra.mxu0 %v3440_v46  ;;  %v3406_v46 = vld [vmem:[%s4670_s1 + $0x6ec] ss:$16 sps:$4 sm:$0xff]  }
  0xd3   :  { %1899 = vmatpush1.bf16.msra.mxu1 %v3347_v44  ;;  %2392 = vmatprep.subr.bf16.mxu0 %v3445_v47  ;;  %v3401_v44 = vld [vmem:[%s4670_s1 + $0x6c8] ss:$16 sps:$4 sm:$0xff]   ;;  %v3478_v47 = vld [vmem:[%s4672_s3 + $0xf4] ss:$8 sps:$4 sm:$0xff]  }
  0xd4   :  { %1900 = vmatprep.subr.bf16.mxu1 %v3352_v45 }
  0xd6   :  { %2393 = vmatpush1.bf16.msra.mxu0 %v3443_v50  ;;  %v3409_v50 = vld [vmem:[%s4670_s1 + $0x70c] ss:$16 sps:$4 sm:$0xff]  }
  0xd7   :  { %1901 = vmatpush1.bf16.msra.mxu1 %v3350_v48  ;;  %2394 = vmatprep.subr.bf16.mxu0 %v3448_v51  ;;  %v3476_v48 = vld [vmem:[%s4672_s3 + $0xf0] ss:$8 sps:$4 sm:$0xff]  }
  0xd8   :  { %1902 = vmatprep.subr.bf16.mxu1 %v3355_v49  ;;  %v3404_v49 = vld [vmem:[%s4670_s1 + $0x6e8] ss:$16 sps:$4 sm:$0xff]  }
  0xd9   :  { %v3407_v51 = vld [vmem:[%s4670_s1 + $0x708] ss:$16 sps:$4 sm:$0xff]  }
  0xda   :  { %2395 = vmatpush1.bf16.msra.mxu0 %v3446_v53  ;;  %v3412_v53 = vld [vmem:[%s4670_s1 + $0x72c] ss:$16 sps:$4 sm:$0xff]  }
  0xdb   :  { %1903 = vmatpush1.bf16.msra.mxu1 %v3353_v52  ;;  %2396 = vmatprep.subr.bf16.mxu0 %v3451_v55  ;;  %v3481_v52 = vld [vmem:[%s4672_s3 + $0x104] ss:$8 sps:$4 sm:$0xff]  }
  0xdc   :  { %1904 = vmatprep.subr.bf16.mxu1 %v3358_v54  ;;  %v3410_v54 = vld [vmem:[%s4670_s1 + $0x728] ss:$16 sps:$4 sm:$0xff]   ;;  %v3415_v55 = vld [vmem:[%s4670_s1 + $0x74c] ss:$16 sps:$4 sm:$0xff]  }
  0xde   :  { %2397 = vmatpush1.bf16.msra.mxu0 %v3449_v57  ;;  %v3418_v57 = vld [vmem:[%s4670_s1 + $0x76c] ss:$16 sps:$4 sm:$0xff]  }
  0xdf   :  { %1905 = vmatpush1.bf16.msra.mxu1 %v3356_v56  ;;  %2398 = vmatprep.subr.bf16.mxu0 %v3454_v59  ;;  %v3413_v56 = vld [vmem:[%s4670_s1 + $0x748] ss:$16 sps:$4 sm:$0xff]   ;;  %v3421_v59 = vld [vmem:[%s4670_s1 + $0x78c] ss:$16 sps:$4 sm:$0xff]  }
  0xe0   :  { %1906 = vmatprep.subr.bf16.mxu1 %v3361_v58  ;;  %v3416_v58 = vld [vmem:[%s4670_s1 + $0x768] ss:$16 sps:$4 sm:$0xff]  }
  0xe2   :  { %2399 = vmatpush1.bf16.msra.mxu0 %v3452_v61  ;;  %v3424_v61 = vld [vmem:[%s4670_s1 + $0x7ac] ss:$16 sps:$4 sm:$0xff]  }
  0xe3   :  { %1907 = vmatpush1.bf16.msra.mxu1 %v3359_v60  ;;  %2400 = vmatprep.subr.bf16.mxu0 %v3457_v0  ;;  %v3419_v60 = vld [vmem:[%s4670_s1 + $0x788] ss:$16 sps:$4 sm:$0xff]   ;;  %v3427_v0 = vld [vmem:[%s4670_s1 + $0x7cc] ss:$16 sps:$4 sm:$0xff]  }
  0xe4   :  { %1908 = vmatprep.subr.bf16.mxu1 %v3364_v62  ;;  %v3422_v62 = vld [vmem:[%s4670_s1 + $0x7a8] ss:$16 sps:$4 sm:$0xff]  }
  0xe6   :  { %2401 = vmatpush1.bf16.msra.mxu0 %v3455_v2  ;;  %v3430_v2 = vld [vmem:[%s4670_s1 + $0x7ec] ss:$16 sps:$4 sm:$0xff]  }
  0xe7   :  { %1909 = vmatpush1.bf16.msra.mxu1 %v3362_v1  ;;  %2402 = vmatprep.subr.bf16.mxu0 %v3460_v5  ;;  %v3425_v1 = vld [vmem:[%s4670_s1 + $0x7c8] ss:$16 sps:$4 sm:$0xff]   ;;  %v288_v5 = vsub.s32 0, %v3701_v42 }
  0xe8   :  { %1910 = vmatprep.subr.bf16.mxu1 %v3367_v4  ;;  %v3428_v4 = vld [vmem:[%s4670_s1 + $0x7e8] ss:$16 sps:$4 sm:$0xff]  }
  0xea   :  { %2403 = vmatpush1.bf16.msra.mxu0 %v3458_v7  ;;  %v292_v7 = vsub.s32 1, %v3701_v42 }
  0xeb   :  { %1911 = vmatpush1.bf16.msra.mxu1 %v3365_v6  ;;  %2404 = vmatprep.subr.bf16.mxu0 %v3463_v9  ;;  %v4503_v6 = vld [vmem:[%s4673_s2] sm:$0xf] }
  0xec   :  { %1912 = vmatprep.subr.bf16.mxu1 %v3370_v8  ;;  %v289_v8 = vrot.slane %v4503_v6, %v288_v5  ;;  %v293_v9 = vrot.slane %v4503_v6, %v292_v7 }
  0xee   :  { %2405 = vmatpush1.bf16.msra.mxu0 %v3461_v11 }
  0xef   :  { %1913 = vmatpush1.bf16.msra.mxu1 %v3368_v10  ;;  %2406 = vmatprep.subr.bf16.mxu0 %v3466_v14 }
  0xf0   :  { %1914 = vmatprep.subr.bf16.mxu1 %v3373_v12 }
  0xf2   :  { %2407 = vmatpush1.bf16.msra.mxu0 %v3464_v16 }
  0xf3   :  { %1915 = vmatpush1.bf16.msra.mxu1 %v3371_v15  ;;  %2408 = vmatprep.subr.bf16.mxu0 %v3469_v18 }
  0xf4   :  { %1916 = vmatprep.subr.bf16.mxu1 %v3376_v17 }
  0xf6   :  { %2409 = vmatpush1.bf16.msra.mxu0 %v3467_v21 }
  0xf7   :  { %1917 = vmatpush1.bf16.msra.mxu1 %v3374_v20  ;;  %2410 = vmatprep.subr.bf16.mxu0 %v3472_v24 }
  0xf8   :  { %1918 = vmatprep.subr.bf16.mxu1 %v3379_v22 }
  0xfa   :  { %2411 = vmatpush1.bf16.msra.mxu0 %v3470_v26 }
  0xfb   :  { %1919 = vmatpush1.bf16.msra.mxu1 %v3377_v25  ;;  %2412 = vmatprep.subr.bf16.mxu0 %v3475_v39  ;;  %v3479_v25 = vld [vmem:[%s4672_s3 + $0x100] ss:$8 sps:$4 sm:$0xff]   ;;  %v3534_v39 = vld [vmem:[%s4674_s5 + $0x18] sm:$0xff]  }
  0xfc   :  { %1920 = vmatprep.subr.bf16.mxu1 %v3382_v27  ;;  %v3484_v27 = vld [vmem:[%s4672_s3 + $0x114] ss:$8 sps:$4 sm:$0xff]  }
  0xfe   :  { %2413 = vmatpush1.bf16.msra.mxu0 %v3473_v41  ;;  %v3536_v41 = vld [vmem:[%s4674_s5 + $0x20] sm:$0xff]  }
  0xff   :  { %1921 = vmatpush1.bf16.msra.mxu1 %v3380_v28  ;;  %2414 = vmatprep.subr.bf16.mxu0 %v3478_v47  ;;  %v3482_v28 = vld [vmem:[%s4672_s3 + $0x110] ss:$8 sps:$4 sm:$0xff]   ;;  %v3497_v47 = vld [vmem:[%s4672_s3 + $0x160] ss:$8 sps:$4 sm:$0xff]  }
 0x100   :  { %1931 = vmatprep.subr.bf16.mxu1 %v3385_v29  ;;  %v3487_v29 = vld [vmem:[%s4672_s3 + $0x124] ss:$8 sps:$4 sm:$0xff]  }
 0x102   :  { %1923 = vmatmul.mubr.bf16.vlgmr.msra.gmra.mrb[4].mxu1 %v3749_v63  ;;  %v3394_v63 = vld [vmem:[%s4670_s1 + $0x66c] ss:$16 sps:$4 sm:$0xff]   ;;  %2415 = vmatpush1.bf16.msra.mxu0 %v3476_v48 }
 0x103   :  { %1932 = vmatpush1.bf16.msra.mxu1 %v3383_v32  ;;  %1963 = vmatprep.mubr.bf16.mxu1 %v4018_v30  ;;  %v3392_v30 = vld [vmem:[%s4670_s1 + $0x668] ss:$16 sps:$4 sm:$0xff]   ;;  %v3527_v32 = vld [vmem:[%s4674_s5 + $0x40] sm:$0xff]   ;;  %v3502_v48 = vld [vmem:[%s4672_s3 + $0x174] ss:$8 sps:$4 sm:$0xff]  }
 0x104   :  { %1933 = vmatprep.subr.bf16.mxu1 %v3388_v33  ;;  %2425 = vmatprep.subr.bf16.mxu0 %v3481_v52  ;;  %v3528_v33 = vld [vmem:[%s4674_s5] sm:$0xff]   ;;  %v3508_v52 = vld [vmem:[%s4672_s3 + $0x194] ss:$8 sps:$4 sm:$0xff]  }
 0x107   :  { %1934 = vmatpush1.bf16.msra.mxu1 %v3386_v13  ;;  %v3485_v13 = vld [vmem:[%s4672_s3 + $0x120] ss:$8 sps:$4 sm:$0xff]  }
 0x108   :  { %1935 = vmatprep.subr.bf16.mxu1 %v3391_v34  ;;  %v3529_v34 = vld [vmem:[%s4674_s5 + $0x48] sm:$0xff]  }
 0x10b   :  { %1936 = vmatpush1.bf16.msra.mxu1 %v3389_v35  ;;  %v3530_v35 = vld [vmem:[%s4674_s5 + $0x8] sm:$0xff]  }
 0x10c   :  { %1937 = vmatprep.subr.bf16.mxu1 %v3394_v63  ;;  %v3531_v63 = vld [vmem:[%s4674_s5 + $0x50] sm:$0xff]  }
 0x10f   :  { %1938 = vmatpush1.bf16.msra.mxu1 %v3392_v30  ;;  %v3490_v30 = vld [vmem:[%s4672_s3 + $0x134] ss:$8 sps:$4 sm:$0xff]  }
 0x110   :  { %1939 = vmatprep.subr.bf16.mxu1 %v3397_v19  ;;  %v3488_v19 = vld [vmem:[%s4672_s3 + $0x130] ss:$8 sps:$4 sm:$0xff]  }
 0x113   :  { %1940 = vmatpush1.bf16.msra.mxu1 %v3395_v36  ;;  %v3532_v36 = vld [vmem:[%s4674_s5 + $0x10] sm:$0xff]  }
 0x114   :  { %1941 = vmatprep.subr.bf16.mxu1 %v3400_v3  ;;  %v3533_v3 = vld [vmem:[%s4674_s5 + $0x58] sm:$0xff]  }
 0x115   :  { %v1678_v38 = vpop.f32.mrb[0].mxu1 }
 0x116   :  { %v1680_v40 = vpop.f32.mrb[1].mxu1  ;;  %v1679_v10 = vadd.f32 %v1678_v38, %v289_v8  ;;  %v3496_v38 = vld [vmem:[%s4672_s3 + $0x154] ss:$8 sps:$4 sm:$0xff]   ;;  %v300_v8 = vsub.s32 3, %v3701_v42 }
 0x117   :  { %v1682_v43 = vpop.f32.mrb[2].mxu1  ;;  %1942 = vmatpush1.bf16.msra.mxu1 %v3398_v23  ;;  %v1681_v11 = vadd.f32 %v1680_v40, %v293_v9  ;;  %v3493_v23 = vld [vmem:[%s4672_s3 + $0x144] ss:$8 sps:$4 sm:$0xff]  }
 0x118   :  { %v1683_v45 = vpop.f32.mrb[3].mxu1  ;;  %1943 = vmatprep.subr.bf16.mxu1 %v3403_v37  ;;  %v3491_v37 = vld [vmem:[%s4672_s3 + $0x140] ss:$8 sps:$4 sm:$0xff]   ;;  %v3494_v43 = vld [vmem:[%s4672_s3 + $0x150] ss:$8 sps:$4 sm:$0xff]  }
 0x119   :  { %v3535_v40 = vld [vmem:[%s4674_s5 + $0x60] sm:$0xff]  }
 0x11a   :  { %v3499_v45 = vld [vmem:[%s4672_s3 + $0x164] ss:$8 sps:$4 sm:$0xff]  }
 0x11b   :  { %1944 = vmatpush1.bf16.msra.mxu1 %v3401_v44  ;;  %v3537_v44 = vld [vmem:[%s4674_s5 + $0x68] sm:$0xff]  }
 0x11c   :  { %1945 = vmatprep.subr.bf16.mxu1 %v3406_v46  ;;  %v3538_v46 = vld [vmem:[%s4674_s5 + $0x28] sm:$0xff]  }
 0x11f   :  { %1946 = vmatpush1.bf16.msra.mxu1 %v3404_v49  ;;  %v3500_v49 = vld [vmem:[%s4672_s3 + $0x170] ss:$8 sps:$4 sm:$0xff]  }
 0x120   :  { %1947 = vmatprep.subr.bf16.mxu1 %v3409_v50  ;;  %v3505_v50 = vld [vmem:[%s4672_s3 + $0x184] ss:$8 sps:$4 sm:$0xff]  }
 0x123   :  { %1948 = vmatpush1.bf16.msra.mxu1 %v3407_v51  ;;  %v3503_v51 = vld [vmem:[%s4672_s3 + $0x180] ss:$8 sps:$4 sm:$0xff]  }
 0x124   :  { %1949 = vmatprep.subr.bf16.mxu1 %v3412_v53  ;;  %v3506_v53 = vld [vmem:[%s4672_s3 + $0x190] ss:$8 sps:$4 sm:$0xff]  }
 0x127   :  { %1950 = vmatpush1.bf16.msra.mxu1 %v3410_v54  ;;  %v3511_v54 = vld [vmem:[%s4672_s3 + $0x1a4] ss:$8 sps:$4 sm:$0xff]  }
 0x128   :  { %1951 = vmatprep.subr.bf16.mxu1 %v3415_v55  ;;  %v3509_v55 = vld [vmem:[%s4672_s3 + $0x1a0] ss:$8 sps:$4 sm:$0xff]  }
 0x12b   :  { %1952 = vmatpush1.bf16.msra.mxu1 %v3413_v56  ;;  %v3514_v56 = vld [vmem:[%s4672_s3 + $0x1b4] ss:$8 sps:$4 sm:$0xff]  }
 0x12c   :  { %1953 = vmatprep.subr.bf16.mxu1 %v3418_v57  ;;  %v3512_v57 = vld [vmem:[%s4672_s3 + $0x1b0] ss:$8 sps:$4 sm:$0xff]  }
 0x12f   :  { %1954 = vmatpush1.bf16.msra.mxu1 %v3416_v58  ;;  %v3517_v58 = vld [vmem:[%s4672_s3 + $0x1c4] ss:$8 sps:$4 sm:$0xff]  }
 0x130   :  { %1955 = vmatprep.subr.bf16.mxu1 %v3421_v59  ;;  %v3515_v59 = vld [vmem:[%s4672_s3 + $0x1c0] ss:$8 sps:$4 sm:$0xff]  }
 0x133   :  { %1956 = vmatpush1.bf16.msra.mxu1 %v3419_v60  ;;  %v3520_v60 = vld [vmem:[%s4672_s3 + $0x1d4] ss:$8 sps:$4 sm:$0xff]  }
 0x134   :  { %1957 = vmatprep.subr.bf16.mxu1 %v3424_v61  ;;  %v3518_v61 = vld [vmem:[%s4672_s3 + $0x1d0] ss:$8 sps:$4 sm:$0xff]  }
 0x137   :  { %1958 = vmatpush1.bf16.msra.mxu1 %v3422_v62  ;;  %v3523_v62 = vld [vmem:[%s4672_s3 + $0x1e4] ss:$8 sps:$4 sm:$0xff]  }
 0x138   :  { %1959 = vmatprep.subr.bf16.mxu1 %v3427_v0  ;;  %v3521_v0 = vld [vmem:[%s4672_s3 + $0x1e0] ss:$8 sps:$4 sm:$0xff]  }
 0x13b   :  { %1960 = vmatpush1.bf16.msra.mxu1 %v3425_v1  ;;  %v3526_v1 = vld [vmem:[%s4672_s3 + $0x1f4] ss:$8 sps:$4 sm:$0xff]  }
 0x13c   :  { %1961 = vmatprep.subr.bf16.mxu1 %v3430_v2  ;;  %v3524_v2 = vld [vmem:[%s4672_s3 + $0x1f0] ss:$8 sps:$4 sm:$0xff]  }
 0x13f   :  { %1962 = vmatpush1.bf16.msra.mxu1 %v3428_v4  ;;  %v296_v4 = vsub.s32 2, %v3701_v42  ;;  %v2974_v42 = vld [vmem:[%s4676_s6] ss:$0 sm:$0xff] }
 0x140   :  { %2991 = vmatprep.subr.bf16.mxu1 %v3527_v32 }
 0x141   :  { %v297_v9 = vrot.slane %v4503_v6, %v296_v4 }
 0x142   :  { %1964 = vmatmul.mubr.bf16.vlgmr.msra.gmra.mrb[4].mxu1 %v4203_v31 }
 0x143   :  { %2992 = vmatpush3.bf16.msra.mxu1 %v3528_v33 }
 0x144   :  { %2993 = vmatprep.subr.bf16.mxu1 %v3529_v34 }
 0x147   :  { %2994 = vmatpush3.bf16.msra.mxu1 %v3530_v35 }
 0x148   :  { %2995 = vmatprep.subr.bf16.mxu1 %v3531_v63 }
 0x14b   :  { %2996 = vmatpush3.bf16.msra.mxu1 %v3532_v36 }
 0x14c   :  { %2997 = vmatprep.subr.bf16.mxu1 %v3533_v3 }
 0x14f   :  { %2998 = vmatpush3.bf16.msra.mxu1 %v3534_v39 }
 0x150   :  { %2999 = vmatprep.subr.bf16.mxu1 %v3535_v40 }
 0x153   :  { %3000 = vmatpush3.bf16.msra.mxu1 %v3536_v41 }
 0x154   :  { %3001 = vmatprep.subr.bf16.mxu1 %v3537_v44 }
 0x157   :  { %3002 = vmatpush3.bf16.msra.mxu1 %v3538_v46 }
 0x196   :  { %v1801_v31 = vpop.f32.mrb[0].mxu0 }
 0x197   :  { %v3014_v12 = vadd.f32 %v1801_v31, %v1679_v10  ;;  %v1803_v14 = vpop.f32.mrb[1].mxu0  ;;  %v301_v10 = vrot.slane %v4503_v6, %v300_v8  ;;  %v3539_v6 = vld [vmem:[%s4674_s5 + $0x70] sm:$0xff]  }
 0x198   :  { %v3016_v15 = vadd.f32 %v1803_v14, %v1681_v11  ;;  %v1805_v16 = vpop.f32.mrb[2].mxu0  ;;  %3003 = vmatprep.subr.bf16.mxu1 %v3539_v6 }
 0x199   :  { %vm1972_vm0 = vcmp.gt.f32.partialorder %v3014_v12, 0.0  ;;  %v1976_v17 = vmul.f32 0.2, %v3014_v12  ;;  %v1806_v18 = vpop.f32.mrb[3].mxu0 }
 0x19a   :  { %vm1973_vm1 = vcmp.gt.f32.partialorder %v3016_v15, 0.0  ;;  %v1977_v20 = vmul.f32 0.2, %v3016_v15 }
 0x19b   :  { %v1980_v21 = vsel %vm1972_vm0, %v3014_v12, %v1976_v17 }
 0x19c   :  { %v1981_v22 = vsel %vm1973_vm1, %v3016_v15, %v1977_v20  ;;  %v1984_v26 = vpack.c.bf16 %v1980_v21, %v1980_v21 }
 0x19d   :  { %v1985_v24 = vpack.c.bf16 %v1981_v22, %v1981_v22 }
 0x19f   :  { %2416 = vmatprep.mubr.bf16.mxu0 %v1985_v24 }
 0x1a0   :  { %2417 = vmatmul.mubr.bf16.vlgmr.msra.gmra.mrb[4].mxu0 %v1984_v26  ;;  %v3541_v26 = vld [vmem:[%s4674_s5 + $0x78] sm:$0xff]  }
 0x1a1   :  { %2426 = vmatpush1.bf16.msra.mxu0 %v3479_v25  ;;  %v3540_v25 = vld [vmem:[%s4674_s5 + $0x30] sm:$0xff]  }
 0x1a2   :  { %2427 = vmatprep.subr.bf16.mxu0 %v3484_v27  ;;  %3004 = vmatpush3.bf16.msra.mxu1 %v3540_v25  ;;  %v3542_v27 = vld [vmem:[%s4674_s5 + $0x38] sm:$0xff]  }
 0x1a3   :  { %3005 = vmatprep.subr.bf16.mxu1 %v3541_v26 }
 0x1a5   :  { %2428 = vmatpush1.bf16.msra.mxu0 %v3482_v28  ;;  %v2052_v28 = vld [vmem:[%s4675_s4] sm:$0x3] }
 0x1a6   :  { %2429 = vmatprep.subr.bf16.mxu0 %v3487_v29  ;;  %3006 = vmatpush3.bf16.msra.mxu1 %v3542_v27  ;;  %v2057_v29 = vrot.slane %v2052_v28, %v288_v5  ;;  %v2061_v32 = vrot.slane %v2052_v28, %v292_v7 }
 0x1a9   :  { %2430 = vmatpush1.bf16.msra.mxu0 %v3485_v13 }
 0x1aa   :  { %2431 = vmatprep.subr.bf16.mxu0 %v3490_v30 }
 0x1ad   :  { %2432 = vmatpush1.bf16.msra.mxu0 %v3488_v19 }
 0x1ae   :  { %2433 = vmatprep.subr.bf16.mxu0 %v3493_v23 }
 0x1b1   :  { %2434 = vmatpush1.bf16.msra.mxu0 %v3491_v37 }
 0x1b2   :  { %2435 = vmatprep.subr.bf16.mxu0 %v3496_v38 }
 0x1b5   :  { %2436 = vmatpush1.bf16.msra.mxu0 %v3494_v43 }
 0x1b6   :  { %2437 = vmatprep.subr.bf16.mxu0 %v3499_v45 }
 0x1b9   :  { %2438 = vmatpush1.bf16.msra.mxu0 %v3497_v47 }
 0x1ba   :  { %2439 = vmatprep.subr.bf16.mxu0 %v3502_v48 }
 0x1bd   :  { %2440 = vmatpush1.bf16.msra.mxu0 %v3500_v49 }
 0x1be   :  { %2441 = vmatprep.subr.bf16.mxu0 %v3505_v50 }
 0x1c1   :  { %2442 = vmatpush1.bf16.msra.mxu0 %v3503_v51 }
 0x1c2   :  { %2443 = vmatprep.subr.bf16.mxu0 %v3508_v52 }
 0x1c5   :  { %2444 = vmatpush1.bf16.msra.mxu0 %v3506_v53 }
 0x1c6   :  { %2445 = vmatprep.subr.bf16.mxu0 %v3511_v54 }
 0x1c9   :  { %2446 = vmatpush1.bf16.msra.mxu0 %v3509_v55 }
 0x1ca   :  { %2447 = vmatprep.subr.bf16.mxu0 %v3514_v56 }
 0x1cd   :  { %2448 = vmatpush1.bf16.msra.mxu0 %v3512_v57 }
 0x1ce   :  { %2449 = vmatprep.subr.bf16.mxu0 %v3517_v58 }
 0x1d1   :  { %2450 = vmatpush1.bf16.msra.mxu0 %v3515_v59 }
 0x1d2   :  { %2451 = vmatprep.subr.bf16.mxu0 %v3520_v60 }
 0x1d5   :  { %2452 = vmatpush1.bf16.msra.mxu0 %v3518_v61 }
 0x1d6   :  { %2453 = vmatprep.subr.bf16.mxu0 %v3523_v62 }
 0x1d9   :  { %2454 = vmatpush1.bf16.msra.mxu0 %v3521_v0 }
 0x1da   :  { %2455 = vmatprep.subr.bf16.mxu0 %v3526_v1 }
 0x1dd   :  { %2456 = vmatpush1.bf16.msra.mxu0 %v3524_v2 }
 0x215   :  { %v1965_v11 = vpop.f32.mrb[4].mxu1 }
 0x216   :  { %v3017_v31 = vadd.f32 %v1965_v11, %v297_v9  ;;  %v1967_v12 = vpop.f32.mrb[5].mxu1 }
 0x217   :  { %v3018_v14 = vadd.f32 %v1967_v12, %v301_v10  ;;  %v1969_v15 = vpop.f32.mrb[6].mxu1 }
 0x218   :  { %vm1974_vm2 = vcmp.gt.f32.partialorder %v3017_v31, 0.0  ;;  %v1978_v16 = vmul.f32 0.2, %v3017_v31  ;;  %v1970_v17 = vpop.f32.mrb[7].mxu1 }
 0x219   :  { %vm1975_vm3 = vcmp.gt.f32.partialorder %v3018_v14, 0.0  ;;  %v1979_v18 = vmul.f32 0.2, %v3018_v14 }
 0x21a   :  { %v1982_v20 = vsel %vm1974_vm2, %v3017_v31, %v1978_v16 }
 0x21b   :  { %v1983_v21 = vsel %vm1975_vm3, %v3018_v14, %v1979_v18  ;;  %v1986_v24 = vpack.c.bf16 %v1982_v20, %v1982_v20 }
 0x21c   :  { %v1987_v22 = vpack.c.bf16 %v1983_v21, %v1983_v21 }
 0x21e   :  { %2457 = vmatprep.mubr.bf16.mxu0 %v1987_v22 }
 0x21f   :  { %2458 = vmatmul.mubr.bf16.vlgmr.msra.gmra.mrb[4].mxu0 %v1986_v24 }
 0x2f2   :  { %v2459_v33 = vpop.f32.mrb[4].mxu0 }
 0x2f3   :  { %v3019_v13 = vadd.f32 %v2459_v33, %v2057_v29  ;;  %v2461_v34 = vpop.f32.mrb[5].mxu0 }
 0x2f4   :  { %v3020_v35 = vadd.f32 %v2461_v34, %v2061_v32  ;;  %v2463_v63 = vpop.f32.mrb[6].mxu0 }
 0x2f5   :  { %vm2466_vm4 = vcmp.gt.f32.partialorder %v3019_v13, 0.0  ;;  %v2468_v30 = vmul.f32 0.2, %v3019_v13  ;;  %v2464_v19 = vpop.f32.mrb[7].mxu0 }
 0x2f6   :  { %vm2467_vm5 = vcmp.gt.f32.partialorder %v3020_v35, 0.0  ;;  %v2469_v36 = vmul.f32 0.2, %v3020_v35 }
 0x2f7   :  { %v2470_v3 = vsel %vm2466_vm4, %v3019_v13, %v2468_v30 }
 0x2f8   :  { %v2471_v23 = vsel %vm2467_vm5, %v3020_v35, %v2469_v36  ;;  %v2472_v38 = vpack.c.bf16 %v2470_v3, %v2470_v3 }
 0x2f9   :  { %v2473_v37 = vpack.c.bf16 %v2471_v23, %v2471_v23 }
 0x2fb   :  { %2641 = vmatprep.mubr.bf16.mxu1 %v2473_v37 }
 0x2fc   :  { %2642 = vmatmul.mubr.bf16.vlgmr.msra.gmra.mrb[8].mxu1 %v2472_v38 }
 0x3cf   :  { %v3007_v5 = vpop.f32.mrb[8].mxu1 }
 0x3d0   :  { %v3008_v7 = vpop.f32.mrb[9].mxu1 }
 0x3d1   :  { %v3009_v39 = vadd.f32 %v3008_v7, %v3007_v5  ;;  %v3010_v40 = vpop.f32.mrb[10].mxu1 }
 0x3d2   :  { %v3011_v41 = vpop.f32.mrb[11].mxu1 }
 0x3d3   :  { %v2644_v43 = vadd.f32 %v3009_v39, %v2974_v42 }
 0x3d5   :  { %2649 = vst [vmem:[%s4677_s7] sm:$0x3] %v2644_v43 }

</bundles_post_ra>
